<compile_context>
chip_gen: v6e
topology: v6e:2x2x1
jax: 0.10.0
libtpu: 0.0.40
codegen_flags: <defaults>
</compile_context>

<pallas_src>
import jax
import jax.numpy as jnp
from jax.experimental import pallas as pl
from jax.experimental.pallas import tpu as pltpu

IN_DIM = 784          # 28*28, hard-coded by the module (Linear(784 + embed_dim, 512))
H1 = 512
H2 = 256
EMBED_DIM = 32
NUM_CLASSES = 10
LEAK = 0.2


# ---------------------------------------------------------------------------
# Kernels
# ---------------------------------------------------------------------------
def _forward_tile(x_ref, e_ref, w1x_ref, w1e_ref, b1_ref, w2_ref, b2_ref,
                  w3_ref, b3_ref):
    """Shared per-tile body: returns (features_f32, sigmoid_output_f32)."""
    # In-kernel bf16 casts (cheap VPU ops; avoids extra wrapper HBM passes).
    x = x_ref[...].astype(jnp.bfloat16)                          # (TM, 784)
    e = e_ref[...].astype(jnp.bfloat16)                          # (TM, E)

    # Linear(784+E, 512): concat removed -> [x | e] @ W1 = x @ W1x + e @ W1e
    h1 = (jnp.dot(x, w1x_ref[...], preferred_element_type=jnp.float32)
          + jnp.dot(e, w1e_ref[...], preferred_element_type=jnp.float32)
          + b1_ref[...])
    h1 = jnp.maximum(h1, LEAK * h1)                              # LeakyReLU(0.2)

    # Linear(512, 256)
    h2 = jnp.dot(h1.astype(jnp.bfloat16), w2_ref[...],
                 preferred_element_type=jnp.float32) + b2_ref[...]
    h2 = jnp.maximum(h2, LEAK * h2)                              # (TM, 256) features

    # Linear(256, 1) + Sigmoid, without a degenerate N=1 MXU matmul:
    # VPU elementwise mul with the (1, 256) w3 row + XLU row-reduce.
    logit = jnp.sum(h2 * w3_ref[...], axis=-1, keepdims=True) + b3_ref[0]
    out = 1.0 / (1.0 + jnp.exp(-logit))                          # (TM, 1)
    return h2, out


def _disc_kernel_feat(x_ref, e_ref, w1x_ref, w1e_ref, b1_ref, w2_ref, b2_ref,
                      w3_ref, b3_ref, out_ref, feat_ref):
    h2, out = _forward_tile(x_ref, e_ref, w1x_ref, w1e_ref, b1_ref,
                            w2_ref, b2_ref, w3_ref, b3_ref)
    feat_ref[...] = h2.astype(feat_ref.dtype)                    # bf16 feature write
    out_ref[...] = out


def _disc_kernel_nofeat(x_ref, e_ref, w1x_ref, w1e_ref, b1_ref, w2_ref, b2_ref,
                        w3_ref, b3_ref, out_ref):
    _, out = _forward_tile(x_ref, e_ref, w1x_ref, w1e_ref, b1_ref,
                           w2_ref, b2_ref, w3_ref, b3_ref)
    out_ref[...] = out


# ---------------------------------------------------------------------------
# Params
# ---------------------------------------------------------------------------
def init_params(key, embed_dim=EMBED_DIM, num_classes=NUM_CLASSES):
    ks = jax.random.split(key, 7)

    def lin(kw, kb, fan_in, fan_out):
        lim = 1.0 / jnp.sqrt(fan_in)
        w = jax.random.uniform(kw, (fan_in, fan_out), jnp.float32, -lim, lim)
        b = jax.random.uniform(kb, (1, fan_out), jnp.float32, -lim, lim)
        return w, b

    emb = jax.random.normal(ks[0], (num_classes, embed_dim), jnp.float32)
    w1, b1 = lin(ks[1], ks[2], IN_DIM + embed_dim, H1)     # stored transposed vs torch
    w2, b2 = lin(ks[3], ks[4], H1, H2)
    lim3 = 1.0 / jnp.sqrt(H2)
    w3 = jax.random.uniform(ks[5], (1, H2), jnp.float32, -lim3, lim3)
    b3 = jax.random.uniform(ks[6], (1,), jnp.float32, -lim3, lim3)

    return dict(
        emb=emb,
        # bf16 weights for the MXU paths (f32 accumulation in-kernel).
        # Deliberate numerics choice vs the f32 torch module (GAN-friendly).
        w1x=w1[:IN_DIM].astype(jnp.bfloat16),
        w1e=w1[IN_DIM:].astype(jnp.bfloat16),
        w2=w2.astype(jnp.bfloat16),
        b1=b1, b2=b2, w3=w3, b3=b3,
    )


# ---------------------------------------------------------------------------
# Wrapper
# ---------------------------------------------------------------------------
def _batch_tile(B: int) -> int:
    """Batch-tile size: >=2 grid steps for v7x's 2 TCs, large tiles for big B."""
    if B <= 32:
        return B                       # single whole-batch tile (block == array dims)
    tm = -(-B // 2)                    # ceil(B/2): at least 2 grid steps
    mult = 128 if tm >= 128 else 8     # sublane / MXU friendly
    tm = -(-tm // mult) * mult
    return min(tm, 1024)               # ~10 MiB / tile, well under VMEM on all gens


def discriminator_forward(params, x, labels, return_features=False):
    B = x.shape[0]
    E = params["w1e"].shape[0]

    # Flatten only (free reshape). bf16 casts happen inside the kernel.
    x_flat = x.reshape(B, -1)                                    # (B, 784) f32
    label_emb = jnp.take(params["emb"], labels, axis=0)          # (B, E)   f32

    tm = _batch_tile(B)
    grid = (pl.cdiv(B, tm),)

    def tiled(cols):
        return pl.BlockSpec((tm, cols), lambda i: (i, 0))

    def resident(shape):               # weights: same block every grid step
        return pl.BlockSpec(shape, lambda i: (0, 0))

    in_specs = [
        tiled(IN_DIM),                          # x tile   (TM, 784) f32
        tiled(E),                               # emb tile (TM, E)   f32
        resident((IN_DIM, H1)),                 # w1x      (784, 512) bf16
        resident((E, H1)),                      # w1e      (E, 512)   bf16
        resident((1, H1)),                      # b1       f32
        resident((H1, H2)),                     # w2       (512, 256) bf16
        resident((1, H2)),                      # b2       f32
        resident((1, H2)),                      # w3 row   (1, 256)   f32
        pl.BlockSpec(memory_space=pltpu.SMEM),  # b3 scalar in SMEM
    ]
    args = (x_flat, label_emb, params["w1x"], params["w1e"], params["b1"],
            params["w2"], params["b2"], params["w3"], params["b3"])
    cparams = pltpu.CompilerParams(
        dimension_semantics=("parallel",),
        vmem_limit_bytes=32 * 1024 * 1024,
    )

    if return_features:
        out, feats = pl.pallas_call(
            _disc_kernel_feat,
            grid=grid,
            out_shape=(jax.ShapeDtypeStruct((B, 1), jnp.float32),
                       jax.ShapeDtypeStruct((B, H2), jnp.bfloat16)),
            in_specs=in_specs,
            out_specs=(tiled(1), tiled(H2)),
            compiler_params=cparams,
        )(*args)
        return out, feats

    out = pl.pallas_call(
        _disc_kernel_nofeat,
        grid=grid,
        out_shape=jax.ShapeDtypeStruct((B, 1), jnp.float32),
        in_specs=in_specs,
        out_specs=tiled(1),
        compiler_params=cparams,
    )(*args)
    return out


# ---------------------------------------------------------------------------
# Pure-JAX reference (mirrors the kernel's dtype choices)
# ---------------------------------------------------------------------------
def _reference_forward(params, x, labels):
    B = x.shape[0]
    x_bf = x.reshape(B, -1).astype(jnp.bfloat16)
    emb = jnp.take(params["emb"], labels, axis=0).astype(jnp.bfloat16)
    h1 = (jnp.dot(x_bf, params["w1x"], preferred_element_type=jnp.float32)
          + jnp.dot(emb, params["w1e"], preferred_element_type=jnp.float32)
          + params["b1"])
    h1 = jnp.maximum(h1, LEAK * h1)
    h2 = jnp.dot(h1.astype(jnp.bfloat16), params["w2"],
                 preferred_element_type=jnp.float32) + params["b2"]
    feats = jnp.maximum(h2, LEAK * h2)
    logit = jnp.sum(feats * params["w3"], axis=-1, keepdims=True) + params["b3"]
    return jax.nn.sigmoid(logit), feats


if __name__ == "__main__":
    key = jax.random.PRNGKey(0)
    k_param, k_x, k_lbl, k_x2, k_lbl2 = jax.random.split(key, 5)

    params = init_params(k_param)

    # Small shapes consistent with the module: MNIST-style (B, 1, 28, 28) NCHW.
    B = 2
    x = jax.random.normal(k_x, (B, 1, 28, 28), jnp.float32)
    labels = jax.random.randint(k_lbl, (B,), 0, NUM_CLASSES)

    out, feats = discriminator_forward(params, x, labels, return_features=True)
    out = jax.block_until_ready(out)
    feats = jax.block_until_ready(feats)

    ref_out, ref_feats = _reference_forward(params, x, labels)
    assert out.shape == (B, 1) and feats.shape == (B, H2)
    assert jnp.allclose(out, ref_out, atol=1e-2, rtol=1e-2)
    assert jnp.allclose(feats.astype(jnp.float32), ref_feats, atol=5e-2, rtol=5e-2)

    # Multi-tile path (grid > 1, ragged last tile) + no-feature fast path.
    B2 = 40
    x2 = jax.random.normal(k_x2, (B2, 1, 28, 28), jnp.float32)
    labels2 = jax.random.randint(k_lbl2, (B2,), 0, NUM_CLASSES)
    out2 = jax.block_until_ready(
        discriminator_forward(params, x2, labels2, return_features=False))
    ref_out2, _ = _reference_forward(params, x2, labels2)
    assert out2.shape == (B2, 1)
    assert jnp.allclose(out2, ref_out2, atol=1e-2, rtol=1e-2)

    print("KERNEL_OK")
</pallas_src>

<mosaic_0001>
module attributes {stable_mosaic.version = 11 : i64} {
  func.func @_disc_kernel_feat(%arg0: i32, %arg1: memref<2x784xf32, #tpu.memory_space<vmem>>, %arg2: memref<2x32xf32, #tpu.memory_space<vmem>>, %arg3: memref<784x512xbf16, #tpu.memory_space<vmem>>, %arg4: memref<32x512xbf16, #tpu.memory_space<vmem>>, %arg5: memref<1x512xf32, #tpu.memory_space<vmem>>, %arg6: memref<512x256xbf16, #tpu.memory_space<vmem>>, %arg7: memref<1x256xf32, #tpu.memory_space<vmem>>, %arg8: memref<1x256xf32, #tpu.memory_space<vmem>>, %arg9: memref<1xf32, #tpu.memory_space<smem>>, %arg10: memref<2x1xf32, #tpu.memory_space<vmem>>, %arg11: memref<2x256xbf16, #tpu.memory_space<vmem>>) attributes {dimension_semantics = [#tpu.dimension_semantics<parallel>], iteration_bounds = array<i64: 1>, scalar_prefetch = 0 : i64, scratch_operands = 0 : i64, tpu.core_type = #tpu.core_type<tc>, window_params = [{transform_indices = @transform_0, window_bounds = array<i64: 2, 784>}, {transform_indices = @transform_1, window_bounds = array<i64: 2, 32>}, {pipeline_mode = #tpu.pipeline_mode<synchronous>, transform_indices = @transform_2, window_bounds = array<i64: 784, 512>}, {pipeline_mode = #tpu.pipeline_mode<synchronous>, transform_indices = @transform_3, window_bounds = array<i64: 32, 512>}, {pipeline_mode = #tpu.pipeline_mode<synchronous>, transform_indices = @transform_4, window_bounds = array<i64: 1, 512>}, {pipeline_mode = #tpu.pipeline_mode<synchronous>, transform_indices = @transform_5, window_bounds = array<i64: 512, 256>}, {pipeline_mode = #tpu.pipeline_mode<synchronous>, transform_indices = @transform_6, window_bounds = array<i64: 1, 256>}, {pipeline_mode = #tpu.pipeline_mode<synchronous>, transform_indices = @transform_7, window_bounds = array<i64: 1, 256>}, {transform_indices = @transform_8, window_bounds = array<i64: 1>}, {transform_indices = @transform_9, window_bounds = array<i64: 2, 1>}, {transform_indices = @transform_10, window_bounds = array<i64: 2, 256>}]} {
    %c0 = arith.constant 0 : index
    %c0_0 = arith.constant 0 : index
    %0 = vector.load %arg1[%c0, %c0_0] : memref<2x784xf32, #tpu.memory_space<vmem>>, vector<2x784xf32>
    %1 = arith.truncf %0 : vector<2x784xf32> to vector<2x784xbf16>
    %c0_1 = arith.constant 0 : index
    %c0_2 = arith.constant 0 : index
    %2 = vector.load %arg2[%c0_1, %c0_2] : memref<2x32xf32, #tpu.memory_space<vmem>>, vector<2x32xf32>
    %3 = arith.truncf %2 : vector<2x32xf32> to vector<2x32xbf16>
    %c0_3 = arith.constant 0 : index
    %c0_4 = arith.constant 0 : index
    %4 = vector.load %arg3[%c0_3, %c0_4] : memref<784x512xbf16, #tpu.memory_space<vmem>>, vector<784x512xbf16>
    %cst = arith.constant dense<0.000000e+00> : vector<2x512xf32>
    %5 = tpu.matmul %1, %4, %cst {dimension_numbers = #tpu.dot_dimension_numbers<[1], [0], [0], [1], [0, 0, 1, 1], [], []>} : vector<2x784xbf16>, vector<784x512xbf16>, vector<2x512xf32> -> vector<2x512xf32>
    %c0_5 = arith.constant 0 : index
    %c0_6 = arith.constant 0 : index
    %6 = vector.load %arg4[%c0_5, %c0_6] : memref<32x512xbf16, #tpu.memory_space<vmem>>, vector<32x512xbf16>
    %cst_7 = arith.constant dense<0.000000e+00> : vector<2x512xf32>
    %7 = tpu.matmul %3, %6, %cst_7 {dimension_numbers = #tpu.dot_dimension_numbers<[1], [0], [0], [1], [0, 0, 1, 1], [], []>} : vector<2x32xbf16>, vector<32x512xbf16>, vector<2x512xf32> -> vector<2x512xf32>
    %8 = arith.addf %5, %7 : vector<2x512xf32>
    %c0_8 = arith.constant 0 : index
    %c0_9 = arith.constant 0 : index
    %9 = vector.load %arg5[%c0_8, %c0_9] : memref<1x512xf32, #tpu.memory_space<vmem>>, vector<1x512xf32>
    %10 = vector.broadcast %9 : vector<1x512xf32> to vector<2x512xf32>
    %11 = arith.addf %8, %10 : vector<2x512xf32>
    %cst_10 = arith.constant 2.000000e-01 : f32
    %12 = vector.broadcast %cst_10 : f32 to vector<2x512xf32>
    %13 = arith.mulf %12, %11 : vector<2x512xf32>
    %14 = arith.maximumf %11, %13 : vector<2x512xf32>
    %15 = arith.truncf %14 : vector<2x512xf32> to vector<2x512xbf16>
    %c0_11 = arith.constant 0 : index
    %c0_12 = arith.constant 0 : index
    %16 = vector.load %arg6[%c0_11, %c0_12] : memref<512x256xbf16, #tpu.memory_space<vmem>>, vector<512x256xbf16>
    %cst_13 = arith.constant dense<0.000000e+00> : vector<2x256xf32>
    %17 = tpu.matmul %15, %16, %cst_13 {dimension_numbers = #tpu.dot_dimension_numbers<[1], [0], [0], [1], [0, 0, 1, 1], [], []>} : vector<2x512xbf16>, vector<512x256xbf16>, vector<2x256xf32> -> vector<2x256xf32>
    %c0_14 = arith.constant 0 : index
    %c0_15 = arith.constant 0 : index
    %18 = vector.load %arg7[%c0_14, %c0_15] : memref<1x256xf32, #tpu.memory_space<vmem>>, vector<1x256xf32>
    %19 = vector.broadcast %18 : vector<1x256xf32> to vector<2x256xf32>
    %20 = arith.addf %17, %19 : vector<2x256xf32>
    %cst_16 = arith.constant 2.000000e-01 : f32
    %21 = vector.broadcast %cst_16 : f32 to vector<2x256xf32>
    %22 = arith.mulf %21, %20 : vector<2x256xf32>
    %23 = arith.maximumf %20, %22 : vector<2x256xf32>
    %c0_17 = arith.constant 0 : index
    %c0_18 = arith.constant 0 : index
    %24 = vector.load %arg8[%c0_17, %c0_18] : memref<1x256xf32, #tpu.memory_space<vmem>>, vector<1x256xf32>
    %25 = vector.broadcast %24 : vector<1x256xf32> to vector<2x256xf32>
    %26 = arith.mulf %23, %25 : vector<2x256xf32>
    %cst_19 = arith.constant dense<0.000000e+00> : vector<2xf32>
    %27 = vector.multi_reduction <add>, %26, %cst_19 [1] : vector<2x256xf32> to vector<2xf32>
    %28 = vector.shape_cast %27 : vector<2xf32> to vector<2x1xf32>
    %c0_20 = arith.constant 0 : index
    %29 = memref.load %arg9[%c0_20] : memref<1xf32, #tpu.memory_space<smem>>
    %30 = vector.broadcast %29 : f32 to vector<2x1xf32>
    %31 = arith.addf %28, %30 : vector<2x1xf32>
    %cst_21 = arith.constant 0.000000e+00 : f32
    %32 = vector.broadcast %cst_21 : f32 to vector<2x1xf32>
    %33 = arith.subf %32, %31 : vector<2x1xf32>
    %34 = math.exp %33 : vector<2x1xf32>
    %cst_22 = arith.constant 1.000000e+00 : f32
    %35 = vector.broadcast %cst_22 : f32 to vector<2x1xf32>
    %36 = arith.addf %35, %34 : vector<2x1xf32>
    %cst_23 = arith.constant 1.000000e+00 : f32
    %37 = vector.broadcast %cst_23 : f32 to vector<2x1xf32>
    %38 = arith.divf %37, %36 : vector<2x1xf32>
    %39 = arith.truncf %23 : vector<2x256xf32> to vector<2x256xbf16>
    %c0_24 = arith.constant 0 : index
    %c0_25 = arith.constant 0 : index
    %40 = vector.load %arg11[%c0_24, %c0_25] : memref<2x256xbf16, #tpu.memory_space<vmem>>, vector<2x256xbf16>
    tpu.vector_store %arg11[%c0_24, %c0_25], %39 {strides = array<i32>} : memref<2x256xbf16, #tpu.memory_space<vmem>>, vector<2x256xbf16>,
    %c0_26 = arith.constant 0 : index
    %c0_27 = arith.constant 0 : index
    %41 = vector.load %arg10[%c0_26, %c0_27] : memref<2x1xf32, #tpu.memory_space<vmem>>, vector<2x1xf32>
    tpu.vector_store %arg10[%c0_26, %c0_27], %38 {strides = array<i32>} : memref<2x1xf32, #tpu.memory_space<vmem>>, vector<2x1xf32>,
    return
  }
  func.func @transform_0(%arg0: i32) -> (i32, i32) {
    %c0_i32 = arith.constant 0 : i32
    %c0_i32_0 = arith.constant 0 : i32
    return %arg0, %c0_i32 : i32, i32
  }
  func.func @transform_1(%arg0: i32) -> (i32, i32) {
    %c0_i32 = arith.constant 0 : i32
    %c0_i32_0 = arith.constant 0 : i32
    return %arg0, %c0_i32 : i32, i32
  }
  func.func @transform_2(%arg0: i32) -> (i32, i32) {
    %c0_i32 = arith.constant 0 : i32
    %c0_i32_0 = arith.constant 0 : i32
    %c0_i32_1 = arith.constant 0 : i32
    return %c0_i32, %c0_i32_0 : i32, i32
  }
  func.func @transform_3(%arg0: i32) -> (i32, i32) {
    %c0_i32 = arith.constant 0 : i32
    %c0_i32_0 = arith.constant 0 : i32
    %c0_i32_1 = arith.constant 0 : i32
    return %c0_i32, %c0_i32_0 : i32, i32
  }
  func.func @transform_4(%arg0: i32) -> (i32, i32) {
    %c0_i32 = arith.constant 0 : i32
    %c0_i32_0 = arith.constant 0 : i32
    %c0_i32_1 = arith.constant 0 : i32
    return %c0_i32, %c0_i32_0 : i32, i32
  }
  func.func @transform_5(%arg0: i32) -> (i32, i32) {
    %c0_i32 = arith.constant 0 : i32
    %c0_i32_0 = arith.constant 0 : i32
    %c0_i32_1 = arith.constant 0 : i32
    return %c0_i32, %c0_i32_0 : i32, i32
  }
  func.func @transform_6(%arg0: i32) -> (i32, i32) {
    %c0_i32 = arith.constant 0 : i32
    %c0_i32_0 = arith.constant 0 : i32
    %c0_i32_1 = arith.constant 0 : i32
    return %c0_i32, %c0_i32_0 : i32, i32
  }
  func.func @transform_7(%arg0: i32) -> (i32, i32) {
    %c0_i32 = arith.constant 0 : i32
    %c0_i32_0 = arith.constant 0 : i32
    %c0_i32_1 = arith.constant 0 : i32
    return %c0_i32, %c0_i32_0 : i32, i32
  }
  func.func @transform_8(%arg0: i32) -> i32 {
    %c0_i32 = arith.constant 0 : i32
    %c0_i32_0 = arith.constant 0 : i32
    return %c0_i32 : i32
  }
  func.func @transform_9(%arg0: i32) -> (i32, i32) {
    %c0_i32 = arith.constant 0 : i32
    %c0_i32_0 = arith.constant 0 : i32
    return %arg0, %c0_i32 : i32, i32
  }
  func.func @transform_10(%arg0: i32) -> (i32, i32) {
    %c0_i32 = arith.constant 0 : i32
    %c0_i32_0 = arith.constant 0 : i32
    return %arg0, %c0_i32 : i32, i32
  }
}

</mosaic_0001>

<bundles_post_ra>
// kernel: tpu_custom_call.1
= control target key start
LH: loop header
LB: loop body
LE: loop exit
PB: predicated region body
PF: predicated region fallthrough
CT: control target
= control target key end

     0   :  { %17 = vsyncpa [#allocation4], 0  ;;  %s3356_s0 = inlined_call_operand.hbm [shape: f32[2,784], index: 0, kind: input, shape index: {}]   ;;  %s3357_s1 = inlined_call_operand.vmem [shape: f32[2,32], index: 1, kind: input, shape index: {}]   ;;  %s3358_s2 = inlined_call_operand.hbm [shape: bf16[784,512], index: 2, kind: input, shape index: {}]   ;;  %s3359_s3 = inlined_call_operand.hbm [shape: bf16[32,512], index: 3, kind: input, shape index: {}]   ;;  %s3360_s4 = inlined_call_operand.vmem [shape: f32[1,512], index: 4, kind: input, shape index: {}]   ;;  %s3361_s5 = inlined_call_operand.hbm [shape: bf16[512,256], index: 5, kind: input, shape index: {}]   ;;  %s3362_s6 = inlined_call_operand.vmem [shape: f32[1,256], index: 6, kind: input, shape index: {}]   ;;  %s3363_s7 = inlined_call_operand.vmem [shape: f32[1,256], index: 7, kind: input, shape index: {}]   ;;  %s3364_s8 = inlined_call_operand.<no memory space> [shape: f32[1], index: 8, kind: input, shape index: {}]   ;;  %s3365_s9 = inlined_call_operand.vmem [shape: f32[2,1], index: 9, kind: output, shape index: {0}]   ;;  %s3366_s10 = inlined_call_operand.hbm [shape: bf16[2,256], index: 10, kind: output, shape index: {1}]  }
   0x1   :  { %18 = vsyncpa [#allocation7], 0 }
   0x2   :  { %19 = vsyncpa [#allocation10], 0 }
   0x3   :  { %20 = vsyncpa [#allocation5], 0  ;;  %s3180_s13 = smov [#allocation6]  }
   0x4   :  { %s38_s14 = sshll.u32 %s3180_s13, 4  ;;  %s39_s14 = int_to_ptr.vmem [resolvable:$true] %s38_s14 }
   0x5   :  { %s3080_s15 = scalar_lea.vmem %s39_s14, 25088  ;;  %p3085_p1 = scmp.lt.s32.totalorder %s39_s14, %s39_s14 }
   0x6   :  { %p3081_p0 = scmp.ne.s32.totalorder %s39_s14, %s3080_s15  ;;  %p3086_p2 = scmp.lt.s32.totalorder %s3080_s15, %s3080_s15 }
   0x8   :  { %p3087_p3 = por %p3086_p2, %p3085_p1 }
   0xa   :  { %p3088_p4 = pnand %p3087_p3, %p3081_p0 }
   0xc   :  { %3091 = shalt.err (!%p3088_p4)
}
   0xd   :  { %s3181_s16 = smov 256   ;;  %s3182_s17 = smov 16  }
   0xe   :  { %44 = dma.hbm_to_vmem [thread:$0]  %s3358_s2, 25088, %s39_s14, [#allocation7], %s3181_s16, %s3181_s16, %s3182_s17  }
   0xf   :  { %s3183_s20 = smov [#allocation3]   ;;  %s3184_s22 = smov [#allocation8]  }
  0x10   :  { %s27_s21 = sshll.u32 %s3183_s20, 4  ;;  %s50_s23 = sshll.u32 %s3184_s22, 4  ;;  %s28_s21 = int_to_ptr.vmem [resolvable:$true] %s27_s21  ;;  %s51_s23 = int_to_ptr.vmem [resolvable:$true] %s50_s23 }
  0x11   :  { %s3100_s24 = scalar_lea.vmem %s28_s21, 224  ;;  %p3105_p6 = scmp.lt.s32.totalorder %s28_s21, %s28_s21 }
  0x12   :  { %p3101_p5 = scmp.ne.s32.totalorder %s28_s21, %s3100_s24  ;;  %p3106_p7 = scmp.lt.s32.totalorder %s3100_s24, %s3100_s24 }
  0x14   :  { %p3107_p8 = por %p3106_p7, %p3105_p6 }
  0x16   :  { %p3108_p9 = pnand %p3107_p8, %p3101_p5 }
  0x18   :  { %3111 = shalt.err (!%p3108_p9)
}
  0x19   :  { %30 = dma.hbm_to_vmem [thread:$0]  %s3356_s0, 224, %s28_s21, [#allocation4]  }
  0x1a   :  { %s3120_s27 = scalar_lea.vmem %s51_s23, 1024  ;;  %p3125_p11 = scmp.lt.s32.totalorder %s51_s23, %s51_s23 }
  0x1b   :  { %p3121_p10 = scmp.ne.s32.totalorder %s51_s23, %s3120_s27  ;;  %p3126_p12 = scmp.lt.s32.totalorder %s3120_s27, %s3120_s27 }
  0x1d   :  { %p3127_p13 = por %p3126_p12, %p3125_p11 }
  0x1f   :  { %p3128_p0 = pnand %p3127_p13, %p3121_p10 }
  0x21   :  { %3131 = shalt.err (!%p3128_p0)
}
  0x22   :  { %56 = dma.hbm_to_vmem [thread:$0]  %s3359_s3, 1024, %s51_s23, [#allocation7], %s3181_s16, %s3181_s16, %s3182_s17  }
  0x23   :  { %s3185_s29 = smov [#allocation9]  }
  0x24   :  { %s64_s30 = sshll.u32 %s3185_s29, 4  ;;  %s65_s30 = int_to_ptr.vmem [resolvable:$true] %s64_s30 }
  0x25   :  { %s3140_s11 = scalar_lea.vmem %s65_s30, 8192  ;;  %p3145_p2 = scmp.lt.s32.totalorder %s65_s30, %s65_s30 }
  0x26   :  { %p3141_p1 = scmp.ne.s32.totalorder %s65_s30, %s3140_s11  ;;  %p3146_p3 = scmp.lt.s32.totalorder %s3140_s11, %s3140_s11 }
  0x28   :  { %p3147_p4 = por %p3146_p3, %p3145_p2 }
  0x2a   :  { %p3148_p5 = pnand %p3147_p4, %p3141_p1 }
  0x2c   :  { %3151 = shalt.err (!%p3148_p5)
}
  0x2d   :  { %s3186_s0 = smov 128   ;;  %s3187_s12 = smov 8  }
  0x2e   :  { %70 = dma.hbm_to_vmem [thread:$0]  %s3361_s5, 8192, %s65_s30, [#allocation10], %s3186_s0, %s3186_s0, %s3187_s12  }
  0x2f   :  { %3172 = dma.done.wait [#allocation4], 224  }
  0x30   :  { %3173 = vsyncadd [#allocation4], 4294967072 }
  0x31   :  { %3174 = dma.done.wait [#allocation7], 26112  }
  0x32   :  { %3175 = vsyncadd [#allocation7], 4294941184 }
  0x33   :  { %3176 = dma.done.wait [#allocation10], 8192  }
  0x34   :  { %3177 = vsyncadd [#allocation10], 4294959104  ;;  %v3188_v0 = vmov 0   ;;  %v2664_v1 = vld [vmem:[#allocation8 + $0x24] ss:$16 sps:$4 sm:$0xff]   ;;  %vm387_vm0 = vcmask 261120   ;;  %v98_v47 = vlaneseq }
  0x35   :  { %423 = vmatprep.mubr.bf16.mxu0 %v3188_v0  ;;  %464 = vmatprep.mubr.bf16.mxu1 %v3188_v0  ;;  %v2666_v2 = vld [vmem:[#allocation8 + $0x2c] ss:$16 sps:$4 sm:$0xff]   ;;  %v2668_v3 = vld [vmem:[#allocation8 + $0x20] ss:$16 sps:$4 sm:$0xff]   ;;  %v2669_v4 = vld [vmem:[#allocation8 + $0x28] ss:$16 sps:$4 sm:$0xff]  }
  0x36   :  { %403 = vmatprep.subr.bf16.mxu0 %v2664_v1  ;;  %444 = vmatprep.subr.bf16.mxu1 %v2666_v2  ;;  %v2670_v5 = vld [vmem:[#allocation8 + $0x4] ss:$16 sps:$4 sm:$0xff]   ;;  %v2672_v6 = vld [vmem:[#allocation8 + $0xc] ss:$16 sps:$4 sm:$0xff]   ;;  %v2674_v7 = vld [vmem:[#allocation8] ss:$16 sps:$4 sm:$0xff]  }
  0x37   :  { %404 = vmatpush1.bf16.msra.mxu0 %v2668_v3  ;;  %445 = vmatpush1.bf16.msra.mxu1 %v2669_v4  ;;  %v2675_v8 = vld [vmem:[#allocation8 + $0x8] ss:$16 sps:$4 sm:$0xff]   ;;  %v141_v9 = vld [vmem:[%s3357_s1] sm:$0x3]  ;;  %v2678_v11 = vld [vmem:[#allocation6 + $0xe4] ss:$16 sps:$4 sm:$0xff]  }
  0x38   :  { %405 = vmatprep.subr.bf16.mxu0 %v2670_v5  ;;  %446 = vmatprep.subr.bf16.mxu1 %v2672_v6  ;;  %v2676_v10 = vld [vmem:[#allocation6 + $0xe0] ss:$16 sps:$4 sm:$0xff]   ;;  %v142_v12 = vpack.c.bf16 %v141_v9, %v141_v9  ;;  %v2681_v14 = vld [vmem:[#allocation6 + $0x2e4] ss:$16 sps:$4 sm:$0xff]   ;;  %v3189_v45 = vmov 1983009808  }
  0x39   :  { %v2679_v13 = vld [vmem:[#allocation6 + $0x2e0] ss:$16 sps:$4 sm:$0xff]   ;;  %v2684_v15 = vld [vmem:[#allocation6 + $0xc4] ss:$16 sps:$4 sm:$0xff]   ;;  %v96_v46 = vunpack.c.l.s4 %v3189_v45  ;;  %v3264_v53 = vshrl.u32 %v98_v47, 7  ;;  %vm1453_vm1 = vcmask 130048  }
  0x3a   :  { %v2687_v16 = vld [vmem:[#allocation6 + $0x2c4] ss:$16 sps:$4 sm:$0xff]   ;;  %v2682_v17 = vld [vmem:[#allocation6 + $0xc0] ss:$16 sps:$4 sm:$0xff]   ;;  %v2791_v45 = vld [vmem:[#allocation6 + $0xcc] ss:$16 sps:$4 sm:$0xff]  }
  0x3b   :  { %406 = vmatpush1.bf16.msra.mxu0 %v2674_v7  ;;  %447 = vmatpush1.bf16.msra.mxu1 %v2675_v8  ;;  %v2685_v18 = vld [vmem:[#allocation6 + $0x2c0] ss:$16 sps:$4 sm:$0xff]   ;;  %v2690_v19 = vld [vmem:[#allocation6 + $0xa4] ss:$16 sps:$4 sm:$0xff]   ;;  %v97_v52 = vunpack.c.0.s8 %v96_v46  ;;  %v2789_v47 = vld [vmem:[#allocation6 + $0xc8] ss:$16 sps:$4 sm:$0xff]  }
  0x3c   :  { %1457 = vmatprep.subr.bf16.mxu0 %v2678_v11  ;;  %1498 = vmatprep.subr.bf16.mxu1 %v2681_v14  ;;  %v2693_v20 = vld [vmem:[#allocation6 + $0x2a4] ss:$16 sps:$4 sm:$0xff]   ;;  %v2688_v21 = vld [vmem:[#allocation6 + $0xa0] ss:$16 sps:$4 sm:$0xff]   ;;  %vm2319_vm2 = vcmask 1041408  }
  0x3d   :  { %v2691_v22 = vld [vmem:[#allocation6 + $0x2a0] ss:$16 sps:$4 sm:$0xff]   ;;  %v2696_v23 = vld [vmem:[#allocation6 + $0x84] ss:$16 sps:$4 sm:$0xff]   ;;  %v3267_v58 = vsub.s32 %v97_v52, %v3264_v53 }
  0x3e   :  { %2386 = vmatmul.mubr.msk.bf16.vlgmr.msra.gmra.mxu0 %vm387_vm0, %v142_v12  ;;  %2387 = vmatmul.mubr.msk.bf16.vlgmr.msra.gmra.mxu1 %vm387_vm0, %v142_v12  ;;  %v2699_v24 = vld [vmem:[#allocation6 + $0x284] ss:$16 sps:$4 sm:$0xff]   ;;  %v2694_v25 = vld [vmem:[#allocation6 + $0x80] ss:$16 sps:$4 sm:$0xff]  }
  0x3f   :  { %1458 = vmatpush1.bf16.msra.mxu0 %v2676_v10  ;;  %1499 = vmatpush1.bf16.msra.mxu1 %v2679_v13  ;;  %v2697_v26 = vld [vmem:[#allocation6 + $0x280] ss:$16 sps:$4 sm:$0xff]   ;;  %v2702_v27 = vld [vmem:[#allocation6 + $0x64] ss:$16 sps:$4 sm:$0xff]  }
  0x40   :  { %1459 = vmatprep.subr.bf16.mxu0 %v2684_v15  ;;  %1500 = vmatprep.subr.bf16.mxu1 %v2687_v16  ;;  %v2705_v28 = vld [vmem:[#allocation6 + $0x264] ss:$16 sps:$4 sm:$0xff]   ;;  %v2700_v29 = vld [vmem:[#allocation6 + $0x60] ss:$16 sps:$4 sm:$0xff]  }
  0x41   :  { %v2703_v30 = vld [vmem:[#allocation6 + $0x260] ss:$16 sps:$4 sm:$0xff]   ;;  %v2708_v31 = vld [vmem:[#allocation6 + $0x44] ss:$16 sps:$4 sm:$0xff]  }
  0x42   :  { %v2711_v32 = vld [vmem:[#allocation6 + $0x244] ss:$16 sps:$4 sm:$0xff]   ;;  %v2706_v33 = vld [vmem:[#allocation6 + $0x40] ss:$16 sps:$4 sm:$0xff]  }
  0x43   :  { %1460 = vmatpush1.bf16.msra.mxu0 %v2682_v17  ;;  %1501 = vmatpush1.bf16.msra.mxu1 %v2685_v18  ;;  %v2709_v34 = vld [vmem:[#allocation6 + $0x240] ss:$16 sps:$4 sm:$0xff]   ;;  %v2714_v35 = vld [vmem:[#allocation6 + $0x24] ss:$16 sps:$4 sm:$0xff]  }
  0x44   :  { %1461 = vmatprep.subr.bf16.mxu0 %v2690_v19  ;;  %1502 = vmatprep.subr.bf16.mxu1 %v2693_v20  ;;  %v2717_v36 = vld [vmem:[#allocation6 + $0x224] ss:$16 sps:$4 sm:$0xff]   ;;  %v2712_v37 = vld [vmem:[#allocation6 + $0x20] ss:$16 sps:$4 sm:$0xff]  }
  0x45   :  { %v2715_v38 = vld [vmem:[#allocation6 + $0x220] ss:$16 sps:$4 sm:$0xff]   ;;  %v2720_v39 = vld [vmem:[#allocation6 + $0x4] ss:$16 sps:$4 sm:$0xff]  }
  0x46   :  { %v2723_v40 = vld [vmem:[#allocation6 + $0x204] ss:$16 sps:$4 sm:$0xff]   ;;  %v2718_v41 = vld [vmem:[#allocation6] ss:$16 sps:$4 sm:$0xff]  }
  0x47   :  { %1462 = vmatpush1.bf16.msra.mxu0 %v2688_v21  ;;  %1503 = vmatpush1.bf16.msra.mxu1 %v2691_v22  ;;  %v2721_v42 = vld [vmem:[#allocation6 + $0x200] ss:$16 sps:$4 sm:$0xff]   ;;  %v2726_v43 = vld [vmem:[#allocation6 + $0x1e4] ss:$16 sps:$4 sm:$0xff]  }
  0x48   :  { %1463 = vmatprep.subr.bf16.mxu0 %v2696_v23  ;;  %1504 = vmatprep.subr.bf16.mxu1 %v2699_v24  ;;  %v2729_v44 = vld [vmem:[#allocation6 + $0x3e4] ss:$16 sps:$4 sm:$0xff]   ;;  %v2724_v48 = vld [vmem:[#allocation6 + $0x1e0] ss:$16 sps:$4 sm:$0xff]   ;;  %v91_v24 = vld [vmem:[#allocation3 + $0x8] sm:$0x3f] }
  0x49   :  { %v2727_v49 = vld [vmem:[#allocation6 + $0x3e0] ss:$16 sps:$4 sm:$0xff]   ;;  %v2732_v50 = vld [vmem:[#allocation6 + $0x1c4] ss:$16 sps:$4 sm:$0xff]  }
  0x4a   :  { %v2735_v51 = vld [vmem:[#allocation6 + $0x3c4] ss:$16 sps:$4 sm:$0xff]   ;;  %v2730_v54 = vld [vmem:[#allocation6 + $0x1c0] ss:$16 sps:$4 sm:$0xff]  }
  0x4b   :  { %1464 = vmatpush1.bf16.msra.mxu0 %v2694_v25  ;;  %1505 = vmatpush1.bf16.msra.mxu1 %v2697_v26  ;;  %v2733_v55 = vld [vmem:[#allocation6 + $0x3c0] ss:$16 sps:$4 sm:$0xff]   ;;  %v2738_v56 = vld [vmem:[#allocation6 + $0x1a4] ss:$16 sps:$4 sm:$0xff]   ;;  %v3278_v25 = vrot.slane %v91_v24, %v3267_v58 }
  0x4c   :  { %1465 = vmatprep.subr.bf16.mxu0 %v2702_v27  ;;  %1506 = vmatprep.subr.bf16.mxu1 %v2705_v28  ;;  %v2741_v57 = vld [vmem:[#allocation6 + $0x3a4] ss:$16 sps:$4 sm:$0xff]   ;;  %v2736_v59 = vld [vmem:[#allocation6 + $0x1a0] ss:$16 sps:$4 sm:$0xff]  }
  0x4d   :  { %v2739_v60 = vld [vmem:[#allocation6 + $0x3a0] ss:$16 sps:$4 sm:$0xff]   ;;  %v2744_v62 = vld [vmem:[#allocation6 + $0x184] ss:$16 sps:$4 sm:$0xff]  }
  0x4e   :  { %v90_v61 = vld [vmem:[#allocation3] sm:$0xff] }
  0x4f   :  { %1466 = vmatpush1.bf16.msra.mxu0 %v2700_v29  ;;  %1507 = vmatpush1.bf16.msra.mxu1 %v2703_v30  ;;  %v2747_v63 = vld [vmem:[#allocation6 + $0x384] ss:$16 sps:$4 sm:$0xff]   ;;  %v101_v1 = vrot.slane %v90_v61, %v3267_v58  ;;  %v94_v2 = vcombine.high %v90_v61, %v90_v61  ;;  %v2742_v5 = vld [vmem:[#allocation6 + $0x180] ss:$16 sps:$4 sm:$0xff]   ;;  %v126_v30 = vcombine.high %v3278_v25, %v3278_v25 }
  0x50   :  { %1467 = vmatprep.subr.bf16.mxu0 %v2708_v31  ;;  %1508 = vmatprep.subr.bf16.mxu1 %v2711_v32  ;;  %v2745_v6 = vld [vmem:[#allocation6 + $0x380] ss:$16 sps:$4 sm:$0xff]   ;;  %v2750_v7 = vld [vmem:[#allocation6 + $0x164] ss:$16 sps:$4 sm:$0xff]  }
  0x51   :  { %v109_v3 = vcombine.high %v101_v1, %v101_v1  ;;  %v108_v4 = vrot.slane %v94_v2, %v3267_v58  ;;  %v2753_v8 = vld [vmem:[#allocation6 + $0x364] ss:$16 sps:$4 sm:$0xff]   ;;  %v2748_v11 = vld [vmem:[#allocation6 + $0x160] ss:$16 sps:$4 sm:$0xff]   ;;  %v3282_v31 = vpack.c.bf16 %v101_v1, %v101_v1  ;;  %v2813_v1 = vld [vmem:[#allocation6 + $0x48] ss:$16 sps:$4 sm:$0xff]  }
  0x52   :  { %v2751_v13 = vld [vmem:[#allocation6 + $0x360] ss:$16 sps:$4 sm:$0xff]   ;;  %v2756_v14 = vld [vmem:[#allocation6 + $0x144] ss:$16 sps:$4 sm:$0xff]  }
  0x53   :  { %1468 = vmatpush1.bf16.msra.mxu0 %v2706_v33  ;;  %1509 = vmatpush1.bf16.msra.mxu1 %v2709_v34  ;;  %v3271_v9 = vpack.c.bf16 %v109_v3, %v109_v3  ;;  %v110_v10 = vcombine.high %v108_v4, %v108_v4  ;;  %v2759_v15 = vld [vmem:[#allocation6 + $0x344] ss:$16 sps:$4 sm:$0xff]   ;;  %v2754_v16 = vld [vmem:[#allocation6 + $0x140] ss:$16 sps:$4 sm:$0xff]   ;;  %v3284_v32 = vpack.c.bf16 %v108_v4, %v108_v4  ;;  %v2821_v3 = vld [vmem:[#allocation6 + $0x2c] ss:$16 sps:$4 sm:$0xff]  }
  0x54   :  { %1469 = vmatprep.subr.bf16.mxu0 %v2714_v35  ;;  %1510 = vmatprep.subr.bf16.mxu1 %v2717_v36  ;;  %v2757_v17 = vld [vmem:[#allocation6 + $0x340] ss:$16 sps:$4 sm:$0xff]   ;;  %v2762_v18 = vld [vmem:[#allocation6 + $0x124] ss:$16 sps:$4 sm:$0xff]   ;;  %v111_v33 = vcombine.high %v91_v24, %v91_v24  ;;  %v2851_v24 = vld [vmem:[#allocation6 + $0x18c] ss:$16 sps:$4 sm:$0xff]  }
  0x55   :  { %1489 = vmatprep.mubr.bf16.mxu0 %v3271_v9  ;;  %v3274_v12 = vpack.c.bf16 %v110_v10, %v110_v10  ;;  %v2765_v19 = vld [vmem:[#allocation6 + $0x324] ss:$16 sps:$4 sm:$0xff]   ;;  %v2760_v20 = vld [vmem:[#allocation6 + $0x120] ss:$16 sps:$4 sm:$0xff]  }
  0x56   :  { %v2763_v21 = vld [vmem:[#allocation6 + $0x320] ss:$16 sps:$4 sm:$0xff]   ;;  %v2768_v22 = vld [vmem:[#allocation6 + $0x104] ss:$16 sps:$4 sm:$0xff]  }
  0x57   :  { %1470 = vmatpush1.bf16.msra.mxu0 %v2712_v37  ;;  %1511 = vmatpush1.bf16.msra.mxu1 %v2715_v38  ;;  %v2771_v23 = vld [vmem:[#allocation6 + $0x304] ss:$16 sps:$4 sm:$0xff]   ;;  %v2766_v26 = vld [vmem:[#allocation6 + $0x100] ss:$16 sps:$4 sm:$0xff]   ;;  %v2784_v37 = vld [vmem:[#allocation6 + $0xec] ss:$16 sps:$4 sm:$0xff]   ;;  %v3286_v38 = vpack.c.bf16 %v126_v30, %v126_v30 }
  0x58   :  { %1471 = vmatprep.subr.bf16.mxu0 %v2720_v39  ;;  %1512 = vmatprep.subr.bf16.mxu1 %v2723_v40  ;;  %v2769_v27 = vld [vmem:[#allocation6 + $0x300] ss:$16 sps:$4 sm:$0xff]   ;;  %v2775_v28 = vld [vmem:[#allocation6 + $0x4e4] ss:$16 sps:$4 sm:$0xff]   ;;  %v125_v39 = vrot.slane %v111_v33, %v3267_v58  ;;  %v2809_v58 = vld [vmem:[#allocation6 + $0x6c] ss:$16 sps:$4 sm:$0xff]  }
  0x59   :  { %1530 = vmatprep.mubr.bf16.mxu1 %v3274_v12  ;;  %v2778_v29 = vld [vmem:[#allocation6 + $0x604] ss:$16 sps:$4 sm:$0xff]   ;;  %v2773_v34 = vld [vmem:[#allocation6 + $0x4e0] ss:$16 sps:$4 sm:$0xff]   ;;  %v2855_v33 = vld [vmem:[#allocation6 + $0x168] ss:$16 sps:$4 sm:$0xff]  }
  0x5a   :  { %v2776_v35 = vld [vmem:[#allocation6 + $0x600] ss:$16 sps:$4 sm:$0xff]   ;;  %v2781_v36 = vld [vmem:[#allocation6 + $0x4c4] ss:$16 sps:$4 sm:$0xff]  }
  0x5b   :  { %1472 = vmatpush1.bf16.msra.mxu0 %v2718_v41  ;;  %1513 = vmatpush1.bf16.msra.mxu1 %v2721_v42  ;;  %v2779_v40 = vld [vmem:[#allocation6 + $0x4c0] ss:$16 sps:$4 sm:$0xff]   ;;  %v2787_v41 = vld [vmem:[#allocation6 + $0x4a4] ss:$16 sps:$4 sm:$0xff]   ;;  %v2782_v42 = vld [vmem:[#allocation6 + $0xe8] ss:$16 sps:$4 sm:$0xff]  }
  0x5c   :  { %1473 = vmatprep.subr.bf16.mxu0 %v2726_v43  ;;  %1514 = vmatprep.subr.bf16.mxu1 %v2729_v44  ;;  %v3293_v43 = vpack.c.bf16 %v125_v39, %v125_v39  ;;  %v2785_v44 = vld [vmem:[#allocation6 + $0x4a0] ss:$16 sps:$4 sm:$0xff]   ;;  %v2794_v46 = vld [vmem:[#allocation6 + $0x484] ss:$16 sps:$4 sm:$0xff]  }
  0x5d   :  { %v2798_v52 = vld [vmem:[#allocation6 + $0x460] ss:$16 sps:$4 sm:$0xff]   ;;  %v2824_v4 = vld [vmem:[#allocation6 + $0x5e4] ss:$16 sps:$4 sm:$0xff]  }
  0x5e   :  { %v2810_v61 = vld [vmem:[#allocation6 + $0x420] ss:$16 sps:$4 sm:$0xff]   ;;  %v2860_v30 = vld [vmem:[#allocation6 + $0x524] ss:$16 sps:$4 sm:$0xff]  }
  0x5f   :  { %1474 = vmatpush2.bf16.msra.mxu0 %v2724_v48  ;;  %1515 = vmatpush2.bf16.msra.mxu1 %v2727_v49  ;;  %v2792_v48 = vld [vmem:[#allocation6 + $0x480] ss:$16 sps:$4 sm:$0xff]   ;;  %v2797_v49 = vld [vmem:[#allocation6 + $0xac] ss:$16 sps:$4 sm:$0xff]  }
  0x60   :  { %1475 = vmatprep.subr.bf16.mxu0 %v2732_v50  ;;  %1516 = vmatprep.subr.bf16.mxu1 %v2735_v51  ;;  %v2800_v50 = vld [vmem:[#allocation6 + $0x464] ss:$16 sps:$4 sm:$0xff]   ;;  %v2795_v51 = vld [vmem:[#allocation6 + $0xa8] ss:$16 sps:$4 sm:$0xff]   ;;  %v2816_v2 = vld [vmem:[#allocation6 + $0x400] ss:$16 sps:$4 sm:$0xff]  }
  0x61   :  { %v2828_v10 = vld [vmem:[#allocation6 + $0x5c0] ss:$16 sps:$4 sm:$0xff]  }
  0x62   :  { %v2864_v39 = vld [vmem:[#allocation6 + $0x500] ss:$16 sps:$4 sm:$0xff]  }
  0x63   :  { %1476 = vmatpush2.bf16.msra.mxu0 %v2730_v54  ;;  %1517 = vmatpush2.bf16.msra.mxu1 %v2733_v55  ;;  %v2803_v54 = vld [vmem:[#allocation6 + $0x8c] ss:$16 sps:$4 sm:$0xff]   ;;  %v2806_v55 = vld [vmem:[#allocation6 + $0x444] ss:$16 sps:$4 sm:$0xff]  }
  0x64   :  { %1477 = vmatprep.subr.bf16.mxu0 %v2738_v56  ;;  %1518 = vmatprep.subr.bf16.mxu1 %v2741_v57  ;;  %v2801_v56 = vld [vmem:[#allocation6 + $0x88] ss:$16 sps:$4 sm:$0xff]   ;;  %v2804_v57 = vld [vmem:[#allocation6 + $0x440] ss:$16 sps:$4 sm:$0xff]  }
  0x67   :  { %1478 = vmatpush2.bf16.msra.mxu0 %v2736_v59  ;;  %1519 = vmatpush2.bf16.msra.mxu1 %v2739_v60  ;;  %v2812_v59 = vld [vmem:[#allocation6 + $0x424] ss:$16 sps:$4 sm:$0xff]   ;;  %v2807_v60 = vld [vmem:[#allocation6 + $0x68] ss:$16 sps:$4 sm:$0xff]  }
  0x68   :  { %1479 = vmatprep.subr.bf16.mxu0 %v2744_v62  ;;  %1520 = vmatprep.subr.bf16.mxu1 %v2747_v63  ;;  %v2815_v62 = vld [vmem:[#allocation6 + $0x4c] ss:$16 sps:$4 sm:$0xff]   ;;  %v2818_v63 = vld [vmem:[#allocation6 + $0x404] ss:$16 sps:$4 sm:$0xff]  }
  0x6b   :  { %1480 = vmatpush2.bf16.msra.mxu0 %v2742_v5  ;;  %1521 = vmatpush2.bf16.msra.mxu1 %v2745_v6  ;;  %v2819_v5 = vld [vmem:[#allocation6 + $0x28] ss:$16 sps:$4 sm:$0xff]   ;;  %v2822_v6 = vld [vmem:[#allocation6 + $0x5e0] ss:$16 sps:$4 sm:$0xff]  }
  0x6c   :  { %1481 = vmatprep.subr.bf16.mxu0 %v2750_v7  ;;  %1522 = vmatprep.subr.bf16.mxu1 %v2753_v8  ;;  %v2827_v7 = vld [vmem:[#allocation6 + $0xc] ss:$16 sps:$4 sm:$0xff]   ;;  %v2830_v8 = vld [vmem:[#allocation6 + $0x5c4] ss:$16 sps:$4 sm:$0xff]  }
  0x6f   :  { %1482 = vmatpush2.bf16.msra.mxu0 %v2748_v11  ;;  %1523 = vmatpush2.bf16.msra.mxu1 %v2751_v13  ;;  %v2833_v11 = vld [vmem:[#allocation6 + $0x1ec] ss:$16 sps:$4 sm:$0xff]   ;;  %v2836_v13 = vld [vmem:[#allocation6 + $0x5a4] ss:$16 sps:$4 sm:$0xff]  }
  0x70   :  { %1483 = vmatprep.subr.bf16.mxu0 %v2756_v14  ;;  %1524 = vmatprep.subr.bf16.mxu1 %v2759_v15  ;;  %v2831_v14 = vld [vmem:[#allocation6 + $0x1e8] ss:$16 sps:$4 sm:$0xff]   ;;  %v2834_v15 = vld [vmem:[#allocation6 + $0x5a0] ss:$16 sps:$4 sm:$0xff]  }
  0x73   :  { %1484 = vmatpush2.bf16.msra.mxu0 %v2754_v16  ;;  %1525 = vmatpush2.bf16.msra.mxu1 %v2757_v17  ;;  %v2839_v16 = vld [vmem:[#allocation6 + $0x1cc] ss:$16 sps:$4 sm:$0xff]   ;;  %v2842_v17 = vld [vmem:[#allocation6 + $0x584] ss:$16 sps:$4 sm:$0xff]  }
  0x74   :  { %1485 = vmatprep.subr.bf16.mxu0 %v2762_v18  ;;  %1526 = vmatprep.subr.bf16.mxu1 %v2765_v19  ;;  %v2837_v18 = vld [vmem:[#allocation6 + $0x1c8] ss:$16 sps:$4 sm:$0xff]   ;;  %v2840_v19 = vld [vmem:[#allocation6 + $0x580] ss:$16 sps:$4 sm:$0xff]  }
  0x77   :  { %1486 = vmatpush2.bf16.msra.mxu0 %v2760_v20  ;;  %1527 = vmatpush2.bf16.msra.mxu1 %v2763_v21  ;;  %v2845_v20 = vld [vmem:[#allocation6 + $0x1ac] ss:$16 sps:$4 sm:$0xff]   ;;  %v2848_v21 = vld [vmem:[#allocation6 + $0x564] ss:$16 sps:$4 sm:$0xff]  }
  0x78   :  { %1487 = vmatprep.subr.bf16.mxu0 %v2768_v22  ;;  %1528 = vmatprep.subr.bf16.mxu1 %v2771_v23  ;;  %v2843_v22 = vld [vmem:[#allocation6 + $0x1a8] ss:$16 sps:$4 sm:$0xff]   ;;  %v2846_v23 = vld [vmem:[#allocation6 + $0x560] ss:$16 sps:$4 sm:$0xff]  }
  0x7b   :  { %1488 = vmatpush2.bf16.msra.mxu0 %v2766_v26  ;;  %1529 = vmatpush2.bf16.msra.mxu1 %v2769_v27  ;;  %v2854_v26 = vld [vmem:[#allocation6 + $0x544] ss:$16 sps:$4 sm:$0xff]   ;;  %v2849_v27 = vld [vmem:[#allocation6 + $0x188] ss:$16 sps:$4 sm:$0xff]  }
  0x7c   :  { %1539 = vmatprep.subr.bf16.mxu0 %v2775_v28  ;;  %1594 = vmatprep.subr.bf16.mxu1 %v2778_v29  ;;  %v2852_v28 = vld [vmem:[#allocation6 + $0x540] ss:$16 sps:$4 sm:$0xff]   ;;  %v2857_v29 = vld [vmem:[#allocation6 + $0x16c] ss:$16 sps:$4 sm:$0xff]  }
  0x7e   :  { %1490 = vmatmul.mubr.bf16.vlgmr.msra.gmra.mxu0 %v3282_v31  ;;  %1531 = vmatmul.mubr.bf16.vlgmr.msra.gmra.mxu1 %v3284_v32 }
  0x7f   :  { %1540 = vmatpush1.bf16.msra.mxu0 %v2773_v34  ;;  %1595 = vmatpush1.bf16.msra.mxu1 %v2776_v35  ;;  %v2858_v34 = vld [vmem:[#allocation6 + $0x520] ss:$16 sps:$4 sm:$0xff]   ;;  %v2863_v35 = vld [vmem:[#allocation6 + $0x14c] ss:$16 sps:$4 sm:$0xff]  }
  0x80   :  { %1541 = vmatprep.subr.bf16.mxu0 %v2781_v36  ;;  %1612 = vmatprep.mubr.bf16.mxu1 %v3188_v0  ;;  %v2866_v36 = vld [vmem:[#allocation6 + $0x504] ss:$16 sps:$4 sm:$0xff]  }
  0x81   :  { %1621 = vmatprep.subr.bf16.mxu1 %v2784_v37  ;;  %1571 = vmatprep.mubr.bf16.mxu0 %v3286_v38  ;;  %v2861_v37 = vld [vmem:[#allocation6 + $0x148] ss:$16 sps:$4 sm:$0xff]  }
  0x83   :  { %1542 = vmatpush1.bf16.msra.mxu0 %v2779_v40  ;;  %v2869_v40 = vld [vmem:[#allocation6 + $0x12c] ss:$16 sps:$4 sm:$0xff]  }
  0x84   :  { %1543 = vmatprep.subr.bf16.mxu0 %v2787_v41  ;;  %v2872_v41 = vld [vmem:[#allocation6 + $0x2ec] ss:$16 sps:$4 sm:$0xff]  }
  0x86   :  { %2584 = vmatmul.mubr.msk.bf16.vlgmr.msra.gmra.mxu1 %vm1453_vm1, %v3293_v43 }
  0x87   :  { %1622 = vmatpush1.bf16.msra.mxu1 %v2782_v42  ;;  %1544 = vmatpush1.bf16.msra.mxu0 %v2785_v44  ;;  %v2867_v42 = vld [vmem:[#allocation6 + $0x128] ss:$16 sps:$4 sm:$0xff]   ;;  %v3300_v44 = vpack.c.bf16 %v3278_v25, %v3278_v25 }
  0x88   :  { %1623 = vmatprep.subr.bf16.mxu1 %v2791_v45  ;;  %1545 = vmatprep.subr.bf16.mxu0 %v2794_v46  ;;  %v2870_v45 = vld [vmem:[#allocation6 + $0x2e8] ss:$16 sps:$4 sm:$0xff]   ;;  %v2875_v46 = vld [vmem:[#allocation6 + $0x10c] ss:$16 sps:$4 sm:$0xff]  }
  0x89   :  { %1653 = vmatprep.mubr.bf16.mxu1 %v3271_v9  ;;  %v2825_v9 = vld [vmem:[#allocation6 + $0x8] ss:$16 sps:$4 sm:$0xff]  }
  0x8a   :  { %v2882_v25 = vld [vmem:[#allocation6 + $0x2a8] ss:$16 sps:$4 sm:$0xff]  }
  0x8b   :  { %1624 = vmatpush1.bf16.msra.mxu1 %v2789_v47  ;;  %1546 = vmatpush1.bf16.msra.mxu0 %v2792_v48  ;;  %v2878_v47 = vld [vmem:[#allocation6 + $0x2cc] ss:$16 sps:$4 sm:$0xff]   ;;  %v2873_v48 = vld [vmem:[#allocation6 + $0x108] ss:$16 sps:$4 sm:$0xff]  }
  0x8c   :  { %1625 = vmatprep.subr.bf16.mxu1 %v2797_v49  ;;  %1547 = vmatprep.subr.bf16.mxu0 %v2800_v50  ;;  %v2876_v49 = vld [vmem:[#allocation6 + $0x2c8] ss:$16 sps:$4 sm:$0xff]   ;;  %v2881_v50 = vld [vmem:[#allocation6 + $0x4ec] ss:$16 sps:$4 sm:$0xff]  }
  0x8f   :  { %1626 = vmatpush1.bf16.msra.mxu1 %v2795_v51  ;;  %1548 = vmatpush1.bf16.msra.mxu0 %v2798_v52  ;;  %v2884_v51 = vld [vmem:[#allocation6 + $0x2ac] ss:$16 sps:$4 sm:$0xff]   ;;  %v2879_v52 = vld [vmem:[#allocation6 + $0x4e8] ss:$16 sps:$4 sm:$0xff]  }
  0x90   :  { %1627 = vmatprep.subr.bf16.mxu1 %v2803_v54  ;;  %1549 = vmatprep.subr.bf16.mxu0 %v2806_v55  ;;  %v2887_v54 = vld [vmem:[#allocation6 + $0x4cc] ss:$16 sps:$4 sm:$0xff]  }
  0x91   :  { %v2890_v55 = vld [vmem:[#allocation6 + $0x28c] ss:$16 sps:$4 sm:$0xff]  }
  0x93   :  { %1628 = vmatpush1.bf16.msra.mxu1 %v2801_v56  ;;  %1550 = vmatpush1.bf16.msra.mxu0 %v2804_v57  ;;  %v2885_v56 = vld [vmem:[#allocation6 + $0x4c8] ss:$16 sps:$4 sm:$0xff]  }
  0x94   :  { %1629 = vmatprep.subr.bf16.mxu1 %v2809_v58  ;;  %1551 = vmatprep.subr.bf16.mxu0 %v2812_v59  ;;  %v2888_v57 = vld [vmem:[#allocation6 + $0x288] ss:$16 sps:$4 sm:$0xff]   ;;  %v2893_v58 = vld [vmem:[#allocation6 + $0x4ac] ss:$16 sps:$4 sm:$0xff]  }
  0x95   :  { %v2896_v59 = vld [vmem:[#allocation6 + $0x26c] ss:$16 sps:$4 sm:$0xff]  }
  0x97   :  { %1630 = vmatpush1.bf16.msra.mxu1 %v2807_v60  ;;  %1552 = vmatpush1.bf16.msra.mxu0 %v2810_v61  ;;  %v2891_v60 = vld [vmem:[#allocation6 + $0x4a8] ss:$16 sps:$4 sm:$0xff]  }
  0x98   :  { %1631 = vmatprep.subr.bf16.mxu1 %v2815_v62  ;;  %1553 = vmatprep.subr.bf16.mxu0 %v2818_v63  ;;  %v2894_v61 = vld [vmem:[#allocation6 + $0x268] ss:$16 sps:$4 sm:$0xff]   ;;  %v2902_v62 = vld [vmem:[#allocation6 + $0x24c] ss:$16 sps:$4 sm:$0xff]  }
  0x99   :  { %v2897_v63 = vld [vmem:[#allocation6 + $0x488] ss:$16 sps:$4 sm:$0xff]  }
  0x9b   :  { %1632 = vmatpush1.bf16.msra.mxu1 %v2813_v1  ;;  %1554 = vmatpush1.bf16.msra.mxu0 %v2816_v2  ;;  %v2905_v1 = vld [vmem:[#allocation6 + $0x46c] ss:$16 sps:$4 sm:$0xff]  }
  0x9c   :  { %1633 = vmatprep.subr.bf16.mxu1 %v2821_v3  ;;  %1555 = vmatprep.subr.bf16.mxu0 %v2824_v4  ;;  %v2908_v2 = vld [vmem:[#allocation6 + $0x22c] ss:$16 sps:$4 sm:$0xff]   ;;  %v2903_v3 = vld [vmem:[#allocation6 + $0x468] ss:$16 sps:$4 sm:$0xff]  }
  0x9d   :  { %v2906_v4 = vld [vmem:[#allocation6 + $0x228] ss:$16 sps:$4 sm:$0xff]  }
  0x9f   :  { %1634 = vmatpush1.bf16.msra.mxu1 %v2819_v5  ;;  %1556 = vmatpush2.bf16.msra.mxu0 %v2822_v6  ;;  %v2911_v5 = vld [vmem:[#allocation6 + $0x44c] ss:$16 sps:$4 sm:$0xff]   ;;  %v2909_v6 = vld [vmem:[#allocation6 + $0x448] ss:$16 sps:$4 sm:$0xff]  }
  0xa0   :  { %1635 = vmatprep.subr.bf16.mxu1 %v2827_v7  ;;  %1557 = vmatprep.subr.bf16.mxu0 %v2830_v8  ;;  %v2912_v7 = vld [vmem:[#allocation6 + $0x208] ss:$16 sps:$4 sm:$0xff]   ;;  %v2917_v8 = vld [vmem:[#allocation6 + $0x42c] ss:$16 sps:$4 sm:$0xff]  }
  0xa3   :  { %1636 = vmatpush1.bf16.msra.mxu1 %v2825_v9  ;;  %1558 = vmatpush2.bf16.msra.mxu0 %v2828_v10  ;;  %v2920_v9 = vld [vmem:[#allocation6 + $0x3ec] ss:$16 sps:$4 sm:$0xff]   ;;  %v2915_v10 = vld [vmem:[#allocation6 + $0x428] ss:$16 sps:$4 sm:$0xff]  }
  0xa4   :  { %1637 = vmatprep.subr.bf16.mxu1 %v2833_v11  ;;  %1559 = vmatprep.subr.bf16.mxu0 %v2836_v13  ;;  %v2918_v11 = vld [vmem:[#allocation6 + $0x3e8] ss:$16 sps:$4 sm:$0xff]   ;;  %v2923_v13 = vld [vmem:[#allocation6 + $0x40c] ss:$16 sps:$4 sm:$0xff]  }
  0xa7   :  { %1638 = vmatpush2.bf16.msra.mxu1 %v2831_v14  ;;  %1560 = vmatpush2.bf16.msra.mxu0 %v2834_v15  ;;  %v2926_v14 = vld [vmem:[#allocation6 + $0x3cc] ss:$16 sps:$4 sm:$0xff]   ;;  %v2921_v15 = vld [vmem:[#allocation6 + $0x408] ss:$16 sps:$4 sm:$0xff]  }
  0xa8   :  { %1639 = vmatprep.subr.bf16.mxu1 %v2839_v16  ;;  %1561 = vmatprep.subr.bf16.mxu0 %v2842_v17  ;;  %v2924_v16 = vld [vmem:[#allocation6 + $0x3c8] ss:$16 sps:$4 sm:$0xff]   ;;  %v2929_v17 = vld [vmem:[#allocation6 + $0x5ec] ss:$16 sps:$4 sm:$0xff]  }
  0xab   :  { %1640 = vmatpush2.bf16.msra.mxu1 %v2837_v18  ;;  %1562 = vmatpush2.bf16.msra.mxu0 %v2840_v19  ;;  %v2932_v18 = vld [vmem:[#allocation6 + $0x3ac] ss:$16 sps:$4 sm:$0xff]   ;;  %v2927_v19 = vld [vmem:[#allocation6 + $0x5e8] ss:$16 sps:$4 sm:$0xff]  }
  0xac   :  { %1641 = vmatprep.subr.bf16.mxu1 %v2845_v20  ;;  %1563 = vmatprep.subr.bf16.mxu0 %v2848_v21  ;;  %v2930_v20 = vld [vmem:[#allocation6 + $0x3a8] ss:$16 sps:$4 sm:$0xff]   ;;  %v2935_v21 = vld [vmem:[#allocation6 + $0x5cc] ss:$16 sps:$4 sm:$0xff]  }
  0xaf   :  { %1642 = vmatpush2.bf16.msra.mxu1 %v2843_v22  ;;  %1564 = vmatpush2.bf16.msra.mxu0 %v2846_v23  ;;  %v2938_v22 = vld [vmem:[#allocation6 + $0x38c] ss:$16 sps:$4 sm:$0xff]   ;;  %v2933_v23 = vld [vmem:[#allocation6 + $0x5c8] ss:$16 sps:$4 sm:$0xff]  }
  0xb0   :  { %1643 = vmatprep.subr.bf16.mxu1 %v2851_v24  ;;  %1565 = vmatprep.subr.bf16.mxu0 %v2854_v26  ;;  %v2936_v24 = vld [vmem:[#allocation6 + $0x388] ss:$16 sps:$4 sm:$0xff]   ;;  %v2941_v26 = vld [vmem:[#allocation6 + $0x5ac] ss:$16 sps:$4 sm:$0xff]  }
  0xb3   :  { %1644 = vmatpush2.bf16.msra.mxu1 %v2849_v27  ;;  %1566 = vmatpush2.bf16.msra.mxu0 %v2852_v28  ;;  %v2944_v27 = vld [vmem:[#allocation6 + $0x36c] ss:$16 sps:$4 sm:$0xff]   ;;  %v2939_v28 = vld [vmem:[#allocation6 + $0x5a8] ss:$16 sps:$4 sm:$0xff]  }
  0xb4   :  { %1645 = vmatprep.subr.bf16.mxu1 %v2857_v29  ;;  %1567 = vmatprep.subr.bf16.mxu0 %v2860_v30  ;;  %v2942_v29 = vld [vmem:[#allocation6 + $0x368] ss:$16 sps:$4 sm:$0xff]   ;;  %v2947_v30 = vld [vmem:[#allocation6 + $0x58c] ss:$16 sps:$4 sm:$0xff]  }
  0xb7   :  { %1646 = vmatpush2.bf16.msra.mxu1 %v2855_v33  ;;  %1568 = vmatpush2.bf16.msra.mxu0 %v2858_v34  ;;  %v2950_v33 = vld [vmem:[#allocation6 + $0x34c] ss:$16 sps:$4 sm:$0xff]   ;;  %v2945_v34 = vld [vmem:[#allocation6 + $0x588] ss:$16 sps:$4 sm:$0xff]  }
  0xb8   :  { %1647 = vmatprep.subr.bf16.mxu1 %v2863_v35  ;;  %1569 = vmatprep.subr.bf16.mxu0 %v2866_v36  ;;  %v2948_v35 = vld [vmem:[#allocation6 + $0x348] ss:$16 sps:$4 sm:$0xff]   ;;  %v2953_v36 = vld [vmem:[#allocation6 + $0x56c] ss:$16 sps:$4 sm:$0xff]  }
  0xbb   :  { %1648 = vmatpush2.bf16.msra.mxu1 %v2861_v37  ;;  %1570 = vmatpush2.bf16.msra.mxu0 %v2864_v39  ;;  %v2956_v37 = vld [vmem:[#allocation6 + $0x32c] ss:$16 sps:$4 sm:$0xff]   ;;  %v2951_v39 = vld [vmem:[#allocation6 + $0x568] ss:$16 sps:$4 sm:$0xff]  }
  0xbc   :  { %1649 = vmatprep.subr.bf16.mxu1 %v2869_v40  ;;  %1662 = vmatprep.subr.bf16.mxu0 %v2872_v41  ;;  %v2954_v40 = vld [vmem:[#allocation6 + $0x328] ss:$16 sps:$4 sm:$0xff]   ;;  %v2959_v41 = vld [vmem:[#allocation6 + $0x54c] ss:$16 sps:$4 sm:$0xff]  }
  0xbe   :  { %1572 = vmatmul.mubr.bf16.vlgmr.msra.gmra.mxu0 %v3300_v44 }
  0xbf   :  { %1650 = vmatpush2.bf16.msra.mxu1 %v2867_v42  ;;  %1663 = vmatpush1.bf16.msra.mxu0 %v2870_v45  ;;  %v2962_v42 = vld [vmem:[#allocation6 + $0x30c] ss:$16 sps:$4 sm:$0xff]   ;;  %v2957_v45 = vld [vmem:[#allocation6 + $0x548] ss:$16 sps:$4 sm:$0xff]  }
  0xc0   :  { %1651 = vmatprep.subr.bf16.mxu1 %v2875_v46  ;;  %1664 = vmatprep.subr.bf16.mxu0 %v2878_v47  ;;  %v2960_v46 = vld [vmem:[#allocation6 + $0x308] ss:$16 sps:$4 sm:$0xff]   ;;  %v2965_v47 = vld [vmem:[#allocation6 + $0x52c] ss:$16 sps:$4 sm:$0xff]  }
  0xc1   :  { %1694 = vmatprep.mubr.bf16.mxu0 %v3274_v12  ;;  %v2899_v12 = vld [vmem:[#allocation6 + $0x48c] ss:$16 sps:$4 sm:$0xff]  }
  0xc3   :  { %1652 = vmatpush2.bf16.msra.mxu1 %v2873_v48  ;;  %1665 = vmatpush1.bf16.msra.mxu0 %v2876_v49  ;;  %v2968_v48 = vld [vmem:[#allocation6 + $0x60c] ss:$16 sps:$4 sm:$0xff]   ;;  %v2963_v49 = vld [vmem:[#allocation6 + $0x528] ss:$16 sps:$4 sm:$0xff]  }
  0xc4   :  { %1703 = vmatprep.subr.bf16.mxu1 %v2881_v50  ;;  %1666 = vmatprep.subr.bf16.mxu0 %v2884_v51  ;;  %v2966_v50 = vld [vmem:[#allocation6 + $0x608] ss:$16 sps:$4 sm:$0xff]   ;;  %v2971_v51 = vld [vmem:[#allocation6 + $0x50c] ss:$16 sps:$4 sm:$0xff]  }
  0xc6   :  { %1654 = vmatmul.mubr.bf16.vlgmr.msra.gmra.mxu1 %v3282_v31  ;;  %v2900_v31 = vld [vmem:[#allocation6 + $0x248] ss:$16 sps:$4 sm:$0xff]  }
  0xc7   :  { %1704 = vmatpush1.bf16.msra.mxu1 %v2879_v52  ;;  %1667 = vmatpush1.bf16.msra.mxu0 %v2882_v25  ;;  %v2974_v52 = vld [vmem:[#allocation9 + $0x74] ss:$8 sps:$4 sm:$0xff]  }
  0xc8   :  { %1705 = vmatprep.subr.bf16.mxu1 %v2887_v54  ;;  %1668 = vmatprep.subr.bf16.mxu0 %v2890_v55  ;;  %v2969_v55 = vld [vmem:[#allocation6 + $0x508] ss:$16 sps:$4 sm:$0xff]  }
  0xc9   :  { %1735 = vmatprep.mubr.bf16.mxu1 %v3286_v38  ;;  %v2914_v38 = vld [vmem:[#allocation6 + $0x20c] ss:$16 sps:$4 sm:$0xff]  }
  0xcb   :  { %1706 = vmatpush1.bf16.msra.mxu1 %v2885_v56  ;;  %1669 = vmatpush1.bf16.msra.mxu0 %v2888_v57 }
  0xcc   :  { %1707 = vmatprep.subr.bf16.mxu1 %v2893_v58  ;;  %1670 = vmatprep.subr.bf16.mxu0 %v2896_v59 }
  0xcf   :  { %1708 = vmatpush1.bf16.msra.mxu1 %v2891_v60  ;;  %1671 = vmatpush1.bf16.msra.mxu0 %v2894_v61  ;;  %v2972_v60 = vld [vmem:[#allocation9 + $0x70] ss:$8 sps:$4 sm:$0xff]  }
  0xd0   :  { %1709 = vmatprep.subr.bf16.mxu1 %v2899_v12  ;;  %1672 = vmatprep.subr.bf16.mxu0 %v2902_v62  ;;  %v2977_v62 = vld [vmem:[#allocation9 + $0x64] ss:$8 sps:$4 sm:$0xff]  }
  0xd3   :  { %1710 = vmatpush1.bf16.msra.mxu1 %v2897_v63  ;;  %1673 = vmatpush1.bf16.msra.mxu0 %v2900_v31  ;;  %v2980_v63 = vld [vmem:[#allocation9 + $0x54] ss:$8 sps:$4 sm:$0xff]   ;;  %v2978_v31 = vld [vmem:[#allocation9 + $0x50] ss:$8 sps:$4 sm:$0xff]  }
  0xd4   :  { %1711 = vmatprep.subr.bf16.mxu1 %v2905_v1  ;;  %1674 = vmatprep.subr.bf16.mxu0 %v2908_v2  ;;  %v3020_v1 = vld [vmem:[#allocation9 + $0x170] ss:$8 sps:$4 sm:$0xff]   ;;  %v3022_v2 = vld [vmem:[#allocation9 + $0x174] ss:$8 sps:$4 sm:$0xff]  }
  0xd7   :  { %1712 = vmatpush1.bf16.msra.mxu1 %v2903_v3  ;;  %1675 = vmatpush1.bf16.msra.mxu0 %v2906_v4  ;;  %v2981_v3 = vld [vmem:[#allocation9 + $0x40] ss:$8 sps:$4 sm:$0xff]   ;;  %v3025_v4 = vld [vmem:[#allocation9 + $0x164] ss:$8 sps:$4 sm:$0xff]  }
  0xd8   :  { %1713 = vmatprep.subr.bf16.mxu1 %v2911_v5  ;;  %1676 = vmatprep.subr.bf16.mxu0 %v2914_v38  ;;  %v2986_v5 = vld [vmem:[#allocation9 + $0x34] ss:$8 sps:$4 sm:$0xff]   ;;  %v2984_v38 = vld [vmem:[#allocation9 + $0x30] ss:$8 sps:$4 sm:$0xff]  }
  0xdb   :  { %1714 = vmatpush1.bf16.msra.mxu1 %v2909_v6  ;;  %1677 = vmatpush1.bf16.msra.mxu0 %v2912_v7  ;;  %v2989_v6 = vld [vmem:[#allocation9 + $0x24] ss:$8 sps:$4 sm:$0xff]   ;;  %v3026_v7 = vld [vmem:[#allocation9 + $0x150] ss:$8 sps:$4 sm:$0xff]  }
  0xdc   :  { %1715 = vmatprep.subr.bf16.mxu1 %v2917_v8  ;;  %1678 = vmatprep.subr.bf16.mxu0 %v2920_v9  ;;  %v3031_v8 = vld [vmem:[#allocation9 + $0x144] ss:$8 sps:$4 sm:$0xff]   ;;  %v2987_v9 = vld [vmem:[#allocation9 + $0x20] ss:$8 sps:$4 sm:$0xff]  }
  0xdf   :  { %1716 = vmatpush1.bf16.msra.mxu1 %v2915_v10  ;;  %1679 = vmatpush2.bf16.msra.mxu0 %v2918_v11  ;;  %v2992_v10 = vld [vmem:[#allocation9 + $0x14] ss:$8 sps:$4 sm:$0xff]   ;;  %v3029_v11 = vld [vmem:[#allocation9 + $0x140] ss:$8 sps:$4 sm:$0xff]  }
  0xe0   :  { %1717 = vmatprep.subr.bf16.mxu1 %v2923_v13  ;;  %1680 = vmatprep.subr.bf16.mxu0 %v2926_v14  ;;  %v3034_v13 = vld [vmem:[#allocation9 + $0x134] ss:$8 sps:$4 sm:$0xff]   ;;  %v2990_v14 = vld [vmem:[#allocation9 + $0x10] ss:$8 sps:$4 sm:$0xff]  }
  0xe3   :  { %1718 = vmatpush1.bf16.msra.mxu1 %v2921_v15  ;;  %1681 = vmatpush2.bf16.msra.mxu0 %v2924_v16  ;;  %v2995_v15 = vld [vmem:[#allocation9 + $0x4] ss:$8 sps:$4 sm:$0xff]   ;;  %v3032_v16 = vld [vmem:[#allocation9 + $0x130] ss:$8 sps:$4 sm:$0xff]  }
  0xe4   :  { %1719 = vmatprep.subr.bf16.mxu1 %v2929_v17  ;;  %1682 = vmatprep.subr.bf16.mxu0 %v2932_v18  ;;  %v3037_v17 = vld [vmem:[#allocation9 + $0x124] ss:$8 sps:$4 sm:$0xff]   ;;  %v2993_v18 = vld [vmem:[#allocation9] ss:$8 sps:$4 sm:$0xff]  }
  0xe7   :  { %1720 = vmatpush2.bf16.msra.mxu1 %v2927_v19  ;;  %1683 = vmatpush2.bf16.msra.mxu0 %v2930_v20  ;;  %v2998_v19 = vld [vmem:[#allocation9 + $0xf4] ss:$8 sps:$4 sm:$0xff]   ;;  %v3035_v20 = vld [vmem:[#allocation9 + $0x120] ss:$8 sps:$4 sm:$0xff]  }
  0xe8   :  { %1721 = vmatprep.subr.bf16.mxu1 %v2935_v21  ;;  %1684 = vmatprep.subr.bf16.mxu0 %v2938_v22  ;;  %v3040_v21 = vld [vmem:[#allocation9 + $0x114] ss:$8 sps:$4 sm:$0xff]   ;;  %v2996_v22 = vld [vmem:[#allocation9 + $0xf0] ss:$8 sps:$4 sm:$0xff]  }
  0xeb   :  { %1722 = vmatpush2.bf16.msra.mxu1 %v2933_v23  ;;  %1685 = vmatpush2.bf16.msra.mxu0 %v2936_v24  ;;  %v3001_v23 = vld [vmem:[#allocation9 + $0xe4] ss:$8 sps:$4 sm:$0xff]   ;;  %v3038_v24 = vld [vmem:[#allocation9 + $0x110] ss:$8 sps:$4 sm:$0xff]  }
  0xec   :  { %1723 = vmatprep.subr.bf16.mxu1 %v2941_v26  ;;  %1686 = vmatprep.subr.bf16.mxu0 %v2944_v27  ;;  %v3043_v26 = vld [vmem:[#allocation9 + $0x104] ss:$8 sps:$4 sm:$0xff]   ;;  %v2999_v27 = vld [vmem:[#allocation9 + $0xe0] ss:$8 sps:$4 sm:$0xff]  }
  0xef   :  { %1724 = vmatpush2.bf16.msra.mxu1 %v2939_v28  ;;  %1687 = vmatpush2.bf16.msra.mxu0 %v2942_v29  ;;  %v3004_v28 = vld [vmem:[#allocation9 + $0xd4] ss:$8 sps:$4 sm:$0xff]   ;;  %v3041_v29 = vld [vmem:[#allocation9 + $0x100] ss:$8 sps:$4 sm:$0xff]  }
  0xf0   :  { %1725 = vmatprep.subr.bf16.mxu1 %v2947_v30  ;;  %1688 = vmatprep.subr.bf16.mxu0 %v2950_v33  ;;  %v3046_v30 = vld [vmem:[#allocation9 + $0x1f4] ss:$8 sps:$4 sm:$0xff]   ;;  %v3002_v33 = vld [vmem:[#allocation9 + $0xd0] ss:$8 sps:$4 sm:$0xff]  }
  0xf3   :  { %1726 = vmatpush2.bf16.msra.mxu1 %v2945_v34  ;;  %1689 = vmatpush2.bf16.msra.mxu0 %v2948_v35  ;;  %v3007_v34 = vld [vmem:[#allocation9 + $0xc4] ss:$8 sps:$4 sm:$0xff]   ;;  %v3044_v35 = vld [vmem:[#allocation9 + $0x1f0] ss:$8 sps:$4 sm:$0xff]  }
  0xf4   :  { %1727 = vmatprep.subr.bf16.mxu1 %v2953_v36  ;;  %1690 = vmatprep.subr.bf16.mxu0 %v2956_v37  ;;  %v3049_v36 = vld [vmem:[#allocation9 + $0x1e4] ss:$8 sps:$4 sm:$0xff]   ;;  %v3005_v37 = vld [vmem:[#allocation9 + $0xc0] ss:$8 sps:$4 sm:$0xff]  }
  0xf7   :  { %1728 = vmatpush2.bf16.msra.mxu1 %v2951_v39  ;;  %1691 = vmatpush2.bf16.msra.mxu0 %v2954_v40  ;;  %v3010_v39 = vld [vmem:[#allocation9 + $0xb4] ss:$8 sps:$4 sm:$0xff]   ;;  %v3047_v40 = vld [vmem:[#allocation9 + $0x1e0] ss:$8 sps:$4 sm:$0xff]  }
  0xf8   :  { %1729 = vmatprep.subr.bf16.mxu1 %v2959_v41  ;;  %1692 = vmatprep.subr.bf16.mxu0 %v2962_v42  ;;  %v3052_v41 = vld [vmem:[#allocation9 + $0x1d4] ss:$8 sps:$4 sm:$0xff]   ;;  %v3008_v42 = vld [vmem:[#allocation9 + $0xb0] ss:$8 sps:$4 sm:$0xff]  }
  0xfb   :  { %1730 = vmatpush2.bf16.msra.mxu1 %v2957_v45  ;;  %1693 = vmatpush2.bf16.msra.mxu0 %v2960_v46  ;;  %v3013_v45 = vld [vmem:[#allocation9 + $0xa4] ss:$8 sps:$4 sm:$0xff]   ;;  %v3050_v46 = vld [vmem:[#allocation9 + $0x1d0] ss:$8 sps:$4 sm:$0xff]  }
  0xfc   :  { %1731 = vmatprep.subr.bf16.mxu1 %v2965_v47  ;;  %1758 = vmatprep.subr.bf16.mxu0 %v2968_v48  ;;  %v3011_v47 = vld [vmem:[#allocation9 + $0xa0] ss:$8 sps:$4 sm:$0xff]   ;;  %v3016_v48 = vld [vmem:[#allocation9 + $0x94] ss:$8 sps:$4 sm:$0xff]  }
  0xfe   :  { %v3306_v25 = vpop.f32.mrf.mxu0  ;;  %v3308_v54 = vpop.f32.mrf.mxu1  ;;  %1695 = vmatmul.mubr.bf16.vlgmr.msra.gmra.mxu0 %v3284_v32  ;;  %v2975_v32 = vld [vmem:[#allocation9 + $0x60] ss:$8 sps:$4 sm:$0xff]  }
  0xff   :  { %1732 = vmatpush2.bf16.msra.mxu1 %v2963_v49  ;;  %1759 = vmatpush1.bf16.msra.mxu0 %v2966_v50  ;;  %v3014_v49 = vld [vmem:[#allocation9 + $0x90] ss:$8 sps:$4 sm:$0xff]   ;;  %v3019_v50 = vld [vmem:[#allocation9 + $0x84] ss:$8 sps:$4 sm:$0xff]  }
 0x100   :  { %v3311_v56 = vpop.f32.mrf.mxu0  ;;  %v3313_v57 = vpop.f32.mrf.mxu1  ;;  %1733 = vmatprep.subr.bf16.mxu1 %v2971_v51  ;;  %1776 = vmatprep.mubr.bf16.mxu0 %v3188_v0  ;;  %v2983_v0 = vld [vmem:[#allocation9 + $0x44] ss:$8 sps:$4 sm:$0xff]  }
 0x101   :  { %2219 = vmatprep.subr.bf16.mxu0 %v2974_v52 }
 0x102   :  { %v429_v58 = vpop.f32.mrf.mxu0  ;;  %v470_v59 = vpop.f32.mrf.mxu1 }
 0x103   :  { %1734 = vmatpush2.bf16.msra.mxu1 %v2969_v55  ;;  %v3017_v58 = vld [vmem:[#allocation9 + $0x80] ss:$8 sps:$4 sm:$0xff]  }
 0x104   :  { %v430_v61 = vpop.f32.mrf.mxu0  ;;  %v471_v12 = vpop.f32.mrf.mxu1  ;;  %2260 = vmatprep.subr.bf16.mxu1 %v3022_v2  ;;  %v3056_v2 = vld [vmem:[#allocation9 + $0x1b0] ss:$8 sps:$4 sm:$0xff]  }
 0x105   :  { %v3055_v61 = vld [vmem:[#allocation9 + $0x1c4] ss:$8 sps:$4 sm:$0xff]  }
 0x106   :  { %1736 = vmatmul.mubr.bf16.vlgmr.msra.gmra.mxu1 %v3300_v44  ;;  %2585 = vmatmul.mubr.msk.bf16.vlgmr.msra.gmra.mxu0 %vm1453_vm1, %v3293_v43  ;;  %v3023_v44 = vld [vmem:[#allocation9 + $0x160] ss:$8 sps:$4 sm:$0xff]   ;;  %v3028_v43 = vld [vmem:[#allocation9 + $0x154] ss:$8 sps:$4 sm:$0xff]  }
 0x107   :  { %2220 = vmatpush1.bf16.msra.mxu0 %v2972_v60  ;;  %2261 = vmatpush1.bf16.msra.mxu1 %v3020_v1  ;;  %v3058_v1 = vld [vmem:[#allocation9 + $0x1b4] ss:$8 sps:$4 sm:$0xff]  }
 0x108   :  { %2221 = vmatprep.subr.bf16.mxu0 %v2977_v62  ;;  %2262 = vmatprep.subr.bf16.mxu1 %v3025_v4  ;;  %v3053_v62 = vld [vmem:[#allocation9 + $0x1c0] ss:$8 sps:$4 sm:$0xff]   ;;  %v3061_v4 = vld [vmem:[#allocation9 + $0x1a4] ss:$8 sps:$4 sm:$0xff]  }
 0x10b   :  { %2222 = vmatpush1.bf16.msra.mxu0 %v2975_v32  ;;  %2263 = vmatpush1.bf16.msra.mxu1 %v3023_v44 }
 0x10c   :  { %2223 = vmatprep.subr.bf16.mxu0 %v2980_v63  ;;  %2264 = vmatprep.subr.bf16.mxu1 %v3028_v43 }
 0x10f   :  { %2224 = vmatpush1.bf16.msra.mxu0 %v2978_v31  ;;  %2265 = vmatpush1.bf16.msra.mxu1 %v3026_v7  ;;  %v3067_v7 = vld [vmem:[#allocation9 + $0x184] ss:$8 sps:$4 sm:$0xff]  }
 0x110   :  { %2225 = vmatprep.subr.bf16.mxu0 %v2983_v0  ;;  %2266 = vmatprep.subr.bf16.mxu1 %v3031_v8  ;;  %v3065_v8 = vld [vmem:[#allocation9 + $0x180] ss:$8 sps:$4 sm:$0xff]  }
 0x113   :  { %2226 = vmatpush1.bf16.msra.mxu0 %v2981_v3  ;;  %2267 = vmatpush1.bf16.msra.mxu1 %v3029_v11  ;;  %v1785_v11 = vld [vmem:[%s3360_s4] sm:$0xf] }
 0x114   :  { %2227 = vmatprep.subr.bf16.mxu0 %v2986_v5  ;;  %2268 = vmatprep.subr.bf16.mxu1 %v3034_v13  ;;  %v3059_v5 = vld [vmem:[#allocation9 + $0x1a0] ss:$8 sps:$4 sm:$0xff]   ;;  %v3328_v13 = vsub.s32 1, %v3264_v53 }
 0x117   :  { %2228 = vmatpush1.bf16.msra.mxu0 %v2984_v38  ;;  %2269 = vmatpush1.bf16.msra.mxu1 %v3032_v16  ;;  %v3064_v38 = vld [vmem:[#allocation9 + $0x194] ss:$8 sps:$4 sm:$0xff]  }
 0x118   :  { %2229 = vmatprep.subr.bf16.mxu0 %v2989_v6  ;;  %2270 = vmatprep.subr.bf16.mxu1 %v3037_v17  ;;  %v3062_v6 = vld [vmem:[#allocation9 + $0x190] ss:$8 sps:$4 sm:$0xff]  }
 0x11b   :  { %2230 = vmatpush1.bf16.msra.mxu0 %v2987_v9  ;;  %2271 = vmatpush1.bf16.msra.mxu1 %v3035_v20 }
 0x11c   :  { %2231 = vmatprep.subr.bf16.mxu0 %v2992_v10  ;;  %2272 = vmatprep.subr.bf16.mxu1 %v3040_v21  ;;  %v3322_v10 = vsub.s32 0, %v3264_v53 }
 0x11e   :  { %v1790_v17 = vrot.slane %v1785_v11, %v3322_v10 }
 0x11f   :  { %2232 = vmatpush1.bf16.msra.mxu0 %v2990_v14  ;;  %2273 = vmatpush1.bf16.msra.mxu1 %v3038_v24 }
 0x120   :  { %2233 = vmatprep.subr.bf16.mxu0 %v2995_v15  ;;  %2274 = vmatprep.subr.bf16.mxu1 %v3043_v26 }
 0x123   :  { %2234 = vmatpush1.bf16.msra.mxu0 %v2993_v18  ;;  %2275 = vmatpush1.bf16.msra.mxu1 %v3041_v29 }
 0x124   :  { %2235 = vmatprep.subr.bf16.mxu0 %v2998_v19  ;;  %2276 = vmatprep.subr.bf16.mxu1 %v3046_v30 }
 0x127   :  { %2236 = vmatpush2.bf16.msra.mxu0 %v2996_v22  ;;  %2277 = vmatpush2.bf16.msra.mxu1 %v3044_v35 }
 0x128   :  { %2237 = vmatprep.subr.bf16.mxu0 %v3001_v23  ;;  %2278 = vmatprep.subr.bf16.mxu1 %v3049_v36 }
 0x12b   :  { %2238 = vmatpush2.bf16.msra.mxu0 %v2999_v27  ;;  %2279 = vmatpush2.bf16.msra.mxu1 %v3047_v40 }
 0x12c   :  { %2239 = vmatprep.subr.bf16.mxu0 %v3004_v28  ;;  %2280 = vmatprep.subr.bf16.mxu1 %v3052_v41 }
 0x12f   :  { %2240 = vmatpush2.bf16.msra.mxu0 %v3002_v33  ;;  %2281 = vmatpush2.bf16.msra.mxu1 %v3050_v46  ;;  %v1797_v46 = vsub.s32 2, %v3264_v53 }
 0x130   :  { %2241 = vmatprep.subr.bf16.mxu0 %v3007_v34  ;;  %2282 = vmatprep.subr.bf16.mxu1 %v3055_v61 }
 0x133   :  { %2242 = vmatpush2.bf16.msra.mxu0 %v3005_v37  ;;  %2283 = vmatpush2.bf16.msra.mxu1 %v3053_v62 }
 0x134   :  { %2243 = vmatprep.subr.bf16.mxu0 %v3010_v39  ;;  %2284 = vmatprep.subr.bf16.mxu1 %v3058_v1 }
 0x137   :  { %2244 = vmatpush2.bf16.msra.mxu0 %v3008_v42  ;;  %2285 = vmatpush2.bf16.msra.mxu1 %v3056_v2 }
 0x138   :  { %2245 = vmatprep.subr.bf16.mxu0 %v3013_v45  ;;  %2286 = vmatprep.subr.bf16.mxu1 %v3061_v4 }
 0x13b   :  { %2246 = vmatpush2.bf16.msra.mxu0 %v3011_v47  ;;  %2287 = vmatpush2.bf16.msra.mxu1 %v3059_v5 }
 0x13c   :  { %2247 = vmatprep.subr.bf16.mxu0 %v3016_v48  ;;  %2288 = vmatprep.subr.bf16.mxu1 %v3064_v38 }
 0x13e   :  { %v1491_v51 = vpop.f32.mrf.mxu0  ;;  %v1532_v52 = vpop.f32.mrf.mxu1 }
 0x13f   :  { %v1492_v55 = vadd.f32 %v1491_v51, %v3306_v25  ;;  %2248 = vmatpush2.bf16.msra.mxu0 %v3014_v49  ;;  %2289 = vmatpush2.bf16.msra.mxu1 %v3062_v6 }
 0x140   :  { %v1493_v59 = vpop.f32.mrf.mxu0  ;;  %v1534_v60 = vpop.f32.mrf.mxu1  ;;  %2249 = vmatprep.subr.bf16.mxu0 %v3019_v50  ;;  %2290 = vmatprep.subr.bf16.mxu1 %v3067_v7  ;;  %v1801_v50 = vsub.s32 3, %v3264_v53 }
 0x141   :  { %v1533_v12 = vadd.f32 %v1532_v52, %v1492_v55  ;;  %v1494_v9 = vadd.f32 %v1493_v59, %v3311_v56  ;;  %v1794_v56 = vrot.slane %v1785_v11, %v3328_v13  ;;  %v1798_v59 = vrot.slane %v1785_v11, %v1797_v46 }
 0x142   :  { %v1495_v32 = vpop.f32.mrf.mxu0  ;;  %v1536_v63 = vpop.f32.mrf.mxu1 }
 0x143   :  { %2250 = vmatpush2.bf16.msra.mxu0 %v3017_v58  ;;  %2291 = vmatpush2.bf16.msra.mxu1 %v3065_v8  ;;  %v1535_v15 = vadd.f32 %v1534_v60, %v1494_v9  ;;  %v1802_v32 = vrot.slane %v1785_v11, %v1801_v50  ;;  %v1887_v9 = vld [vmem:[%s3362_s6] sm:$0x3]  ;;  %s3191_s6 = smov [#allocation11]  }
 0x144   :  { %v1496_v31 = vpop.f32.mrf.mxu0  ;;  %v1537_v0 = vpop.f32.mrf.mxu1  ;;  %v1892_v11 = vrot.slane %v1887_v9, %v3322_v10 }
 0x146   :  { %v1614_v3 = vpop.f32.mrf.mxu1 }
 0x148   :  { %v1616_v25 = vpop.f32.mrf.mxu1 }
 0x14a   :  { %v1618_v44 = vpop.f32.mrf.mxu1 }
 0x14c   :  { %v1619_v43 = vpop.f32.mrf.mxu1 }
 0x17e   :  { %v1573_v14 = vpop.f32.mrf.mxu0 }
 0x17f   :  { %v1574_v16 = vadd.f32 %v1573_v14, %v1533_v12  ;;  %v1896_v14 = vrot.slane %v1887_v9, %v3328_v13 }
 0x180   :  { %v1575_v18 = vpop.f32.mrf.mxu0 }
 0x181   :  { %v1615_v19 = vadd.f32 %v1614_v3, %v1574_v16  ;;  %v1576_v20 = vadd.f32 %v1575_v18, %v1535_v15  ;;  %v3190_v16 = vmov 1966171168  }
 0x182   :  { %v1577_v21 = vpop.f32.mrf.mxu0 }
 0x183   :  { %v1807_v22 = vadd.f32 %v1790_v17, %v1615_v19  ;;  %v1617_v23 = vadd.f32 %v1616_v25, %v1576_v20  ;;  %v2340_v17 = vunpack.c.l.s4 %v3190_v16  ;;  %v2305_v19 = vld [vmem:[%s3363_s7] sm:$0x3]  ;;  %s2365_s7 = sshll.u32 %s3191_s6, 4  ;;  %s2366_s7 = int_to_ptr.vmem [resolvable:$true] %s2365_s7 }
 0x184   :  { %v1578_v24 = vpop.f32.mrf.mxu0  ;;  %s3152_s19 = scalar_lea.vmem %s2366_s7, 32  ;;  %p3157_p7 = scmp.lt.s32.totalorder %s2366_s7, %s2366_s7 }
 0x185   :  { %v1811_v26 = vmul.f32 0.2, %v1807_v22  ;;  %v1808_v27 = vadd.f32 %v1794_v56, %v1617_v23  ;;  %v2310_v24 = vrot.slane %v2305_v19, %v3322_v10  ;;  %p3153_p6 = scmp.ne.s32.totalorder %s2366_s7, %s3152_s19  ;;  %p3158_p8 = scmp.lt.s32.totalorder %s3152_s19, %s3152_s19 }
 0x186   :  { %v1655_v28 = vpop.f32.mrf.mxu1 }
 0x187   :  { %v1812_v29 = vmul.f32 0.2, %v1808_v27  ;;  %v1815_v30 = vmax.f32 %v1807_v22, %v1811_v26  ;;  %v1656_v45 = vadd.f32 %v1655_v28, %v3308_v54  ;;  %v2341_v26 = vunpack.c.0.s8 %v2340_v17  ;;  %p3159_p9 = por %p3158_p8, %p3157_p7 }
 0x188   :  { %v1657_v33 = vpop.f32.mrf.mxu1 }
 0x189   :  { %v1816_v34 = vmax.f32 %v1808_v27, %v1812_v29  ;;  %v1819_v37 = vpack.c.bf16 %v1815_v30, %v1815_v30  ;;  %v1658_v48 = vadd.f32 %v1657_v33, %v3313_v57  ;;  %v2314_v30 = vrot.slane %v2305_v19, %v3328_v13  ;;  %p3160_p10 = pnand %p3159_p9, %p3153_p6 }
 0x18a   :  { %v1659_v35 = vpop.f32.mrf.mxu1 }
 0x18b   :  { %v1820_v36 = vpack.c.bf16 %v1816_v34, %v1816_v34 }
 0x18c   :  { %v1660_v39 = vpop.f32.mrf.mxu1 }
 0x18d   :  { %2251 = vmatprep.mubr.bf16.mxu0 %v1820_v36  ;;  %v2344_v36 = vsub.s32 %v2341_v26, %v3264_v53 }
 0x18e   :  { %2252 = vmatmul.mubr.bf16.vlgmr.msra.gmra.mxu0 %v1819_v37 }
 0x1be   :  { %v1696_v40 = vpop.f32.mrf.mxu0 }
 0x1bf   :  { %v1697_v49 = vadd.f32 %v1696_v40, %v1656_v45 }
 0x1c0   :  { %v1698_v41 = vpop.f32.mrf.mxu0 }
 0x1c1   :  { %v1699_v55 = vadd.f32 %v1698_v41, %v1658_v48 }
 0x1c2   :  { %v1700_v42 = vpop.f32.mrf.mxu0 }
 0x1c4   :  { %v1701_v47 = vpop.f32.mrf.mxu0 }
 0x1c6   :  { %v1737_v51 = vpop.f32.mrf.mxu1  ;;  %v1778_v52 = vpop.f32.mrf.mxu0 }
 0x1c7   :  { %v1738_v58 = vadd.f32 %v1737_v51, %v1697_v49 }
 0x1c8   :  { %v1739_v60 = vpop.f32.mrf.mxu1  ;;  %v1780_v61 = vpop.f32.mrf.mxu0 }
 0x1c9   :  { %v1779_v12 = vadd.f32 %v1778_v52, %v1738_v58  ;;  %v1740_v62 = vadd.f32 %v1739_v60, %v1699_v55 }
 0x1ca   :  { %v1741_v63 = vpop.f32.mrf.mxu1  ;;  %v1782_v54 = vpop.f32.mrf.mxu0 }
 0x1cb   :  { %v1809_v31 = vadd.f32 %v1798_v59, %v1779_v12  ;;  %v1781_v0 = vadd.f32 %v1780_v61, %v1740_v62 }
 0x1cc   :  { %v1742_v1 = vpop.f32.mrf.mxu1  ;;  %v1783_v2 = vpop.f32.mrf.mxu0 }
 0x1cd   :  { %v1813_v57 = vmul.f32 0.2, %v1809_v31  ;;  %v1810_v3 = vadd.f32 %v1802_v32, %v1781_v0 }
 0x1cf   :  { %v1814_v25 = vmul.f32 0.2, %v1810_v3  ;;  %v1817_v4 = vmax.f32 %v1809_v31, %v1813_v57 }
 0x1d1   :  { %v1818_v5 = vmax.f32 %v1810_v3, %v1814_v25  ;;  %v1821_v43 = vpack.c.bf16 %v1817_v4, %v1817_v4 }
 0x1d3   :  { %v1822_v44 = vpack.c.bf16 %v1818_v5, %v1818_v5 }
 0x1d5   :  { %2292 = vmatprep.mubr.bf16.mxu1 %v1822_v44 }
 0x1d6   :  { %2293 = vmatmul.mubr.bf16.vlgmr.msra.gmra.mxu1 %v1821_v43 }
 0x24e   :  { %v2253_v38 = vpop.f32.mrf.mxu0 }
 0x24f   :  { %v2254_v15 = vadd.f32 %v2253_v38, %v1892_v11 }
 0x250   :  { %v2255_v6 = vpop.f32.mrf.mxu0 }
 0x251   :  { %v2256_v20 = vadd.f32 %v2255_v6, %v1896_v14 }
 0x252   :  { %v2257_v7 = vpop.f32.mrf.mxu0 }
 0x254   :  { %v2258_v8 = vpop.f32.mrf.mxu0 }
 0x296   :  { %v2294_v18 = vpop.f32.mrf.mxu1 }
 0x297   :  { %v2295_v56 = vadd.f32 %v2294_v18, %v2254_v15 }
 0x298   :  { %v2296_v21 = vpop.f32.mrf.mxu1 }
 0x299   :  { %v2301_v22 = vmul.f32 0.2, %v2295_v56  ;;  %v2297_v23 = vadd.f32 %v2296_v21, %v2256_v20 }
 0x29a   :  { %v2298_v27 = vpop.f32.mrf.mxu1 }
 0x29b   :  { %v2303_v28 = vmax.f32 %v2295_v56, %v2301_v22  ;;  %v2302_v29 = vmul.f32 0.2, %v2297_v23 }
 0x29c   :  { %v2299_v33 = vpop.f32.mrf.mxu1 }
 0x29d   :  { %v2304_v34 = vmax.f32 %v2297_v23, %v2302_v29  ;;  %v2317_v35 = vmul.f32 %v2310_v24, %v2303_v28 }
 0x29f   :  { %v2650_v37 = vpack.c.bf16 %v2304_v34, %v2303_v28  ;;  %v2318_v39 = vmul.f32 %v2314_v30, %v2304_v34  ;;  %v2320_v40 = vsel %vm2319_vm2, %v2317_v35, 0.0 }
 0x2a1   :  { %v2321_v41 = vsel %vm2319_vm2, %v2318_v39, 0.0  ;;  %v2345_v42 = vrot.slane %v2650_v37, %v2344_v36 }
 0x2a2   :  { %v2322_v45 = vadd.f32 %v2321_v41, %v2320_v40 }
 0x2a3   :  { %2651 = vst.sshfl [vmem:[#allocation11] sm:$0x5 pattern:$0x73625140] %v2345_v42 }
 0x2a4   :  { %2323 = vadd.xlane.f32.xlu0 %v2322_v45 }
 0x2a5   :  { %3163 = shalt.err (!%p3160_p10)
}
 0x2a6   :  { %2368 = dma.vmem_to_hbm [thread:$0]  %s2366_s7, 32, %s3366_s10, [#allocation5]   ;;  %v2326_v53 = vstv %s3364_s8  ;;  %vm2355_vm3 = vcmask 1024  }
 0x32d   :  { %v2324_v10 = vpop.xlane.xlu0 %2323 }
 0x32e   :  { %v2327_v13 = vadd.f32 %v2326_v53, %v2324_v10 }
 0x330   :  { %v2328_v46 = vsub.f32 0.0, %v2327_v13 }
 0x332   :  { %v2329_v47 = vmul.f32 1.442695, %v2328_v46 }
 0x334   :  { %3068 = vpow2.f32 %v2329_v47 }
 0x341   :  { %v3069_v48 = vpop.eup %3068 }
 0x342   :  { %v2331_v49 = vadd.f32 1.0, %v3069_v48 }
 0x344   :  { %3070 = vrcp.f32 %v2331_v49 }
 0x351   :  { %v3071_v50 = vpop.eup %3070 }
 0x352   :  { %2356 = vst.msk [vmem:[%s3365_s9] sm:$0x3] %vm2355_vm3, %v3071_v50 }
 0x353   :  { %3178 = dma.done.wait [#allocation5], 32  }
 0x354   :  { %3179 = vsyncadd [#allocation5], 4294967264 }
 0x355   :  { %2374 = vsyncpa [#allocation4], 1 }
 0x356   :  { %2375 = vsyncpa [#allocation7], 1 }
 0x357   :  { %2376 = vsyncpa [#allocation10], 1 }
 0x358   :  { %2377 = vsyncpa [#allocation5], 1 }

</bundles_post_ra>
